<compile_context>
chip_gen: v7x
topology: tpu7x:2x2x1
jax: 0.10.0
libtpu: 0.0.40
codegen_flags: <defaults>
</compile_context>

<pallas_src>
import jax
import jax.numpy as jnp
from jax.experimental import pallas as pl
from jax.experimental.pallas import tpu as pltpu


# ----------------------------------------------------------------------------
# Kernel
# ----------------------------------------------------------------------------
def make_psablock_kernel(C, H, W, Bt, matmul_dtype=None):
    HW = H * W

    def kernel(x_ref, sc_ref, bi_ref, pool_ref, exp_ref,
               w1_ref, bn1_ref, w2_ref, bn2_ref, o_ref):
        x = x_ref[...]                                   # (Bt*C, HW) lane-dense

        # ---- LCA attention (fused pooling / gating / expansion) ------------
        # One MXU matmul for both pools: columns [0:H]=mean over W, [H:H+W]=mean over H.
        xp = jnp.dot(x, pool_ref[...], preferred_element_type=jnp.float32)   # (Bt*C, H+W)
        # Depthwise 1x1 conv (+bias) on both pooled maps + one sigmoid pass.
        g = jax.nn.sigmoid(xp * sc_ref[...] + bi_ref[...])                   # (Bt*C, H+W)
        # One expansion matmul against blockdiag(exp_h, exp_w): lanes [0:HW] hold
        # a_h broadcast over W, lanes [HW:2HW] hold a_w broadcast over H.
        full = jnp.dot(g, exp_ref[...], preferred_element_type=jnp.float32)  # (Bt*C, 2*HW)
        gate = full[:, :HW] * full[:, HW:]                                   # 128-aligned slices
        # Fused attention + shortcut: y1 = x + x*a_h*a_w = x * (1 + gate)
        y1 = x.astype(jnp.float32) * (1.0 + gate)                            # (Bt*C, HW)

        # ---- FFN: block-diagonal stacked 1x1 convs (one matmul per layer) ---
        w1 = w1_ref[...]                                 # (Bt*2C, Bt*C) block-diag
        w2 = w2_ref[...]                                 # (Bt*C, Bt*2C) block-diag
        bn1 = bn1_ref[...]                               # (Bt*2C, 2) folded BN1 [scale, bias]
        bn2 = bn2_ref[...]                               # (Bt*C, 2)  folded BN2 [scale, bias]

        lhs1 = y1
        if matmul_dtype is not None:
            w1 = w1.astype(matmul_dtype)
            w2 = w2.astype(matmul_dtype)
            lhs1 = y1.astype(matmul_dtype)

        h1 = jnp.dot(w1, lhs1, preferred_element_type=jnp.float32)           # (Bt*2C, HW)
        h1 = h1 * bn1[:, 0:1] + bn1[:, 1:2]                                  # folded BN1
        h1 = h1 * jax.nn.sigmoid(h1)                                         # SiLU
        lhs2 = h1 if matmul_dtype is None else h1.astype(matmul_dtype)
        h2 = jnp.dot(w2, lhs2, preferred_element_type=jnp.float32)           # (Bt*C, HW)
        h2 = h2 * bn2[:, 0:1] + bn2[:, 1:2]                                  # folded BN2

        # shortcut + single lane-dense full-block unmasked store
        o_ref[...] = (y1 + h2).astype(o_ref.dtype)

    return kernel


# ----------------------------------------------------------------------------
# Generation-aware sizing helpers
# ----------------------------------------------------------------------------
def _device_kind():
    try:
        return jax.devices()[0].device_kind.lower()
    except Exception:
        return ""


def _num_tensorcores():
    kind = _device_kind()
    # v7x has 2 TensorCores per chip; v4/v5p megacore also shards "parallel" axes.
    if "v7" in kind or "v4" in kind or "v5p" in kind:
        return 2
    return 1


def _native_mxu_k():
    kind = _device_kind()
    if "v2" in kind or "v3" in kind or "v4" in kind or "v5" in kind:
        return 128
    return 256   # v6e / v7x


def _vmem_budget_bytes():
    phys = None
    try:
        info = pltpu.get_tpu_info()
        phys = int(getattr(info, "vmem_capacity_bytes", 0)) or None
    except Exception:
        phys = None
    if phys is None:
        phys = 64 * 1024 * 1024           # conservative (v7x-sized) fallback
    if phys <= 64 * 1024 * 1024:
        return 48 * 1024 * 1024           # v7x: stay well inside 64 MiB physical
    return 96 * 1024 * 1024               # v5e / v6e: 128 MiB physical


def _pick_batch_tile(B, C, H, W, itemsize, native_k, num_cores, tile_cap_bytes):
    """Largest batch tile whose working set (incl. double-buffering and constant
    operands) fits the cap, keeps the stacked-FFN K within one native MXU pass,
    respects the (8,128) sublane rule, and keeps >=2 grid steps on multi-TC chips."""
    HW = H * W
    k_cap = max(native_k, C)

    def block_bytes(bt):
        bc = bt * C
        io = 2 * 2 * bc * (HW + (H + W)) * itemsize                # x/out + scale/bias, double-buffered
        tmp = 8 * bc * HW * 4                                      # y1, full(2HW), gate, h1(2C), h2 ...
        consts = 2 * 4 * (HW * (H + W) + (H + W) * 2 * HW          # pool, exp (assume double-buffered)
                          + 4 * (bt * C) * (bt * C)                # w1_blk + w2_blk
                          + 6 * bt * C)                            # bn1/bn2
        return io + tmp + consts

    best = None
    for bt in range(1, B + 1):
        if B % bt:
            continue
        if bt * C > k_cap:
            continue
        if (bt * C) % 8 and bt != B:
            continue
        if block_bytes(bt) > tile_cap_bytes:
            continue
        if num_cores > 1 and B >= 2 and B // bt < 2:
            continue                                                # keep both TCs busy
        best = bt
    if best is None:
        best = 1  # TODO(synk): a single image may still exceed VMEM for huge C*HW
    return best


# ----------------------------------------------------------------------------
# Wrapper
# ----------------------------------------------------------------------------
def psablock_forward(x, wh, bh, ww, bw, w1, s1, t1, w2, s2, t2,
                     batch_tile=None, matmul_dtype=None):
    B, C, H, W = x.shape
    HW = H * W
    f32 = jnp.float32
    itemsize = jnp.dtype(x.dtype).itemsize

    num_cores = _num_tensorcores()
    native_k = _native_mxu_k()
    vmem_budget = _vmem_budget_bytes()
    tile_cap = vmem_budget // 4

    Bt = batch_tile if batch_tile is not None else _pick_batch_tile(
        B, C, H, W, itemsize, native_k, num_cores, tile_cap)
    assert B % Bt == 0

    # Lane-dense layout: flatten spatial dims OUTSIDE the kernel (free reshape).
    x2d = x.reshape(B * C, HW)

    # ---- constant pooling / expansion matrices (flat pixel index p = h*W + w) ----
    hw_idx = jnp.arange(HW)
    row = hw_idx // W
    col = hw_idx % W
    pool_h = (row[:, None] == jnp.arange(H)[None, :]).astype(f32) / W     # (HW, H): mean over W
    pool_w = (col[:, None] == jnp.arange(W)[None, :]).astype(f32) / H     # (HW, W): mean over H
    pool_hw = jnp.concatenate([pool_h, pool_w], axis=1)                   # (HW, H+W)

    exp_blk = jnp.zeros((H + W, 2 * HW), f32)                             # blockdiag(exp_h, exp_w)
    exp_blk = exp_blk.at[:H, :HW].set(
        (jnp.arange(H)[:, None] == row[None, :]).astype(f32))
    exp_blk = exp_blk.at[H:, HW:].set(
        (jnp.arange(W)[:, None] == col[None, :]).astype(f32))             # (H+W, 2*HW)

    # ---- packed LCA depthwise-conv params: one FMA + one sigmoid covers both gates ----
    lca_scale = jnp.tile(
        jnp.concatenate([jnp.broadcast_to(wh.astype(f32), (C, H)),
                         jnp.broadcast_to(ww.astype(f32), (C, W))], axis=1), (B, 1))  # (B*C, H+W)
    lca_bias = jnp.tile(
        jnp.concatenate([jnp.broadcast_to(bh.astype(f32), (C, H)),
                         jnp.broadcast_to(bw.astype(f32), (C, W))], axis=1), (B, 1))  # (B*C, H+W)

    # ---- block-diagonal stacked FFN weights + tiled folded-BN params ----
    eye_bt = jnp.eye(Bt, dtype=f32)
    w1_blk = jnp.kron(eye_bt, w1.astype(f32))                             # (Bt*2C, Bt*C)
    w2_blk = jnp.kron(eye_bt, w2.astype(f32))                             # (Bt*C, Bt*2C)
    bn1_blk = jnp.tile(jnp.concatenate([s1, t1], axis=1).astype(f32), (Bt, 1))  # (Bt*2C, 2)
    bn2_blk = jnp.tile(jnp.concatenate([s2, t2], axis=1).astype(f32), (Bt, 1))  # (Bt*C, 2)

    kernel = make_psablock_kernel(C, H, W, Bt, matmul_dtype)

    def fixed(shape):
        return pl.BlockSpec(shape, lambda i: tuple(0 for _ in shape))

    in_specs = [
        pl.BlockSpec((Bt * C, HW), lambda i: (i, 0)),        # x (lane-dense)
        pl.BlockSpec((Bt * C, H + W), lambda i: (i, 0)),     # packed LCA scale
        pl.BlockSpec((Bt * C, H + W), lambda i: (i, 0)),     # packed LCA bias
        fixed((HW, H + W)),                                   # fused pooling matrix
        fixed((H + W, 2 * HW)),                               # fused expansion matrix
        fixed((Bt * 2 * C, Bt * C)),                          # block-diag FFN conv1 weight
        fixed((Bt * 2 * C, 2)),                               # folded BN1 [scale, bias]
        fixed((Bt * C, Bt * 2 * C)),                          # block-diag FFN conv2 weight
        fixed((Bt * C, 2)),                                   # folded BN2 [scale, bias]
    ]
    out_spec = pl.BlockSpec((Bt * C, HW), lambda i: (i, 0))

    out2d = pl.pallas_call(
        kernel,
        out_shape=jax.ShapeDtypeStruct((B * C, HW), x.dtype),
        grid_spec=pltpu.PrefetchScalarGridSpec(
            num_scalar_prefetch=0,
            grid=(B // Bt,),
            in_specs=in_specs,
            out_specs=out_spec,
        ),
        compiler_params=pltpu.CompilerParams(
            dimension_semantics=("parallel",),
            vmem_limit_bytes=int(vmem_budget),
        ),
    )(x2d, lca_scale, lca_bias, pool_hw, exp_blk, w1_blk, bn1_blk, w2_blk, bn2_blk)

    return out2d.reshape(B, C, H, W)


# ----------------------------------------------------------------------------
# Plain-JAX reference (mirrors the PyTorch forward, eval mode)
# ----------------------------------------------------------------------------
def psablock_ref(x, wh, bh, ww, bw, w1, s1, t1, w2, s2, t2):
    x_h = jnp.mean(x, axis=3)                                   # (B, C, H)
    x_w = jnp.mean(x, axis=2)                                   # (B, C, W)
    a_h = jax.nn.sigmoid(x_h * wh[:, 0][None, :, None] + bh[:, 0][None, :, None])
    a_w = jax.nn.sigmoid(x_w * ww[:, 0][None, :, None] + bw[:, 0][None, :, None])
    attn = (x * a_w[:, :, None, :]) * a_h[:, :, :, None]
    y1 = x + attn
    h1 = jnp.einsum('oc,bchw->bohw', w1, y1)
    h1 = h1 * s1[:, 0][None, :, None, None] + t1[:, 0][None, :, None, None]
    h1 = h1 * jax.nn.sigmoid(h1)
    h2 = jnp.einsum('oc,bchw->bohw', w2, h1)
    h2 = h2 * s2[:, 0][None, :, None, None] + t2[:, 0][None, :, None, None]
    return y1 + h2


if __name__ == "__main__":
    B, C, H, W = 4, 16, 16, 16
    key = jax.random.PRNGKey(0)
    ks = jax.random.split(key, 16)

    x = jax.random.normal(ks[0], (B, C, H, W), dtype=jnp.float32)

    # LCA depthwise 1x1 conv params (weight (C,1,1,1) -> (C,1), bias (C,) -> (C,1))
    wh = jax.random.normal(ks[1], (C, 1), dtype=jnp.float32) * 0.5
    bh = jax.random.normal(ks[2], (C, 1), dtype=jnp.float32) * 0.1
    ww = jax.random.normal(ks[3], (C, 1), dtype=jnp.float32) * 0.5
    bw = jax.random.normal(ks[4], (C, 1), dtype=jnp.float32) * 0.1

    # FFN conv weights (1x1, no bias): (2C, C, 1, 1) -> (2C, C); (C, 2C, 1, 1) -> (C, 2C)
    w1 = jax.random.normal(ks[5], (2 * C, C), dtype=jnp.float32) / jnp.sqrt(C)
    w2 = jax.random.normal(ks[6], (C, 2 * C), dtype=jnp.float32) / jnp.sqrt(2 * C)

    # BatchNorm2d (eval mode) folded into per-channel scale/bias.
    eps = 1e-5
    g1 = 1.0 + 0.1 * jax.random.normal(ks[7], (2 * C, 1), dtype=jnp.float32)
    be1 = 0.1 * jax.random.normal(ks[8], (2 * C, 1), dtype=jnp.float32)
    m1 = 0.1 * jax.random.normal(ks[9], (2 * C, 1), dtype=jnp.float32)
    v1 = 1.0 + 0.1 * jnp.abs(jax.random.normal(ks[10], (2 * C, 1), dtype=jnp.float32))
    s1 = g1 / jnp.sqrt(v1 + eps)
    t1 = be1 - m1 * s1

    g2 = 1.0 + 0.1 * jax.random.normal(ks[11], (C, 1), dtype=jnp.float32)
    be2 = 0.1 * jax.random.normal(ks[12], (C, 1), dtype=jnp.float32)
    m2 = 0.1 * jax.random.normal(ks[13], (C, 1), dtype=jnp.float32)
    v2 = 1.0 + 0.1 * jnp.abs(jax.random.normal(ks[14], (C, 1), dtype=jnp.float32))
    s2 = g2 / jnp.sqrt(v2 + eps)
    t2 = be2 - m2 * s2

    out = psablock_forward(x, wh, bh, ww, bw, w1, s1, t1, w2, s2, t2)
    out = jax.block_until_ready(out)

    ref = psablock_ref(x, wh, bh, ww, bw, w1, s1, t1, w2, s2, t2)
    assert out.shape == (B, C, H, W)
    assert jnp.allclose(out, ref, rtol=1e-4, atol=1e-4), "mismatch vs JAX reference"

    print("KERNEL_OK")
</pallas_src>

<mosaic_0001>
module attributes {stable_mosaic.version = 11 : i64} {
  func.func @kernel(%arg0: i32, %arg1: memref<64x256xf32, #tpu.memory_space<vmem>>, %arg2: memref<64x32xf32, #tpu.memory_space<vmem>>, %arg3: memref<64x32xf32, #tpu.memory_space<vmem>>, %arg4: memref<256x32xf32, #tpu.memory_space<vmem>>, %arg5: memref<32x512xf32, #tpu.memory_space<vmem>>, %arg6: memref<128x64xf32, #tpu.memory_space<vmem>>, %arg7: memref<128x2xf32, #tpu.memory_space<vmem>>, %arg8: memref<64x128xf32, #tpu.memory_space<vmem>>, %arg9: memref<64x2xf32, #tpu.memory_space<vmem>>, %arg10: memref<64x256xf32, #tpu.memory_space<vmem>>) attributes {dimension_semantics = [#tpu.dimension_semantics<parallel>], iteration_bounds = array<i64: 1>, scalar_prefetch = 0 : i64, scratch_operands = 0 : i64, tpu.core_type = #tpu.core_type<tc>, window_params = [{transform_indices = @transform_0, window_bounds = array<i64: 64, 256>}, {transform_indices = @transform_1, window_bounds = array<i64: 64, 32>}, {transform_indices = @transform_2, window_bounds = array<i64: 64, 32>}, {pipeline_mode = #tpu.pipeline_mode<synchronous>, transform_indices = @transform_3, window_bounds = array<i64: 256, 32>}, {pipeline_mode = #tpu.pipeline_mode<synchronous>, transform_indices = @transform_4, window_bounds = array<i64: 32, 512>}, {pipeline_mode = #tpu.pipeline_mode<synchronous>, transform_indices = @transform_5, window_bounds = array<i64: 128, 64>}, {pipeline_mode = #tpu.pipeline_mode<synchronous>, transform_indices = @transform_6, window_bounds = array<i64: 128, 2>}, {pipeline_mode = #tpu.pipeline_mode<synchronous>, transform_indices = @transform_7, window_bounds = array<i64: 64, 128>}, {pipeline_mode = #tpu.pipeline_mode<synchronous>, transform_indices = @transform_8, window_bounds = array<i64: 64, 2>}, {transform_indices = @transform_9, window_bounds = array<i64: 64, 256>}]} {
    %c0 = arith.constant 0 : index
    %c0_0 = arith.constant 0 : index
    %0 = vector.load %arg1[%c0, %c0_0] : memref<64x256xf32, #tpu.memory_space<vmem>>, vector<64x256xf32>
    %c0_1 = arith.constant 0 : index
    %c0_2 = arith.constant 0 : index
    %1 = vector.load %arg4[%c0_1, %c0_2] : memref<256x32xf32, #tpu.memory_space<vmem>>, vector<256x32xf32>
    %cst = arith.constant dense<0.000000e+00> : vector<64x32xf32>
    %2 = tpu.matmul %0, %1, %cst {dimension_numbers = #tpu.dot_dimension_numbers<[1], [0], [0], [1], [0, 0, 1, 1], [], []>} : vector<64x256xf32>, vector<256x32xf32>, vector<64x32xf32> -> vector<64x32xf32>
    %c0_3 = arith.constant 0 : index
    %c0_4 = arith.constant 0 : index
    %3 = vector.load %arg2[%c0_3, %c0_4] : memref<64x32xf32, #tpu.memory_space<vmem>>, vector<64x32xf32>
    %4 = arith.mulf %2, %3 : vector<64x32xf32>
    %c0_5 = arith.constant 0 : index
    %c0_6 = arith.constant 0 : index
    %5 = vector.load %arg3[%c0_5, %c0_6] : memref<64x32xf32, #tpu.memory_space<vmem>>, vector<64x32xf32>
    %6 = arith.addf %4, %5 : vector<64x32xf32>
    %7 = arith.negf %6 : vector<64x32xf32>
    %8 = math.exp %7 : vector<64x32xf32>
    %cst_7 = arith.constant 1.000000e+00 : f32
    %9 = vector.broadcast %cst_7 : f32 to vector<64x32xf32>
    %10 = arith.addf %9, %8 : vector<64x32xf32>
    %11 = arith.divf %9, %10 : vector<64x32xf32>
    %c0_8 = arith.constant 0 : index
    %c0_9 = arith.constant 0 : index
    %12 = vector.load %arg5[%c0_8, %c0_9] : memref<32x512xf32, #tpu.memory_space<vmem>>, vector<32x512xf32>
    %cst_10 = arith.constant dense<0.000000e+00> : vector<64x512xf32>
    %13 = tpu.matmul %11, %12, %cst_10 {dimension_numbers = #tpu.dot_dimension_numbers<[1], [0], [0], [1], [0, 0, 1, 1], [], []>} : vector<64x32xf32>, vector<32x512xf32>, vector<64x512xf32> -> vector<64x512xf32>
    %14 = vector.extract_strided_slice %13 {offsets = [0, 0], sizes = [64, 256], strides = [1, 1]} : vector<64x512xf32> to vector<64x256xf32>
    %15 = vector.extract_strided_slice %13 {offsets = [0, 256], sizes = [64, 256], strides = [1, 1]} : vector<64x512xf32> to vector<64x256xf32>
    %16 = arith.mulf %14, %15 : vector<64x256xf32>
    %cst_11 = arith.constant 1.000000e+00 : f32
    %17 = vector.broadcast %cst_11 : f32 to vector<64x256xf32>
    %18 = arith.addf %17, %16 : vector<64x256xf32>
    %19 = arith.mulf %0, %18 : vector<64x256xf32>
    %c0_12 = arith.constant 0 : index
    %c0_13 = arith.constant 0 : index
    %20 = vector.load %arg6[%c0_12, %c0_13] : memref<128x64xf32, #tpu.memory_space<vmem>>, vector<128x64xf32>
    %c0_14 = arith.constant 0 : index
    %c0_15 = arith.constant 0 : index
    %21 = vector.load %arg8[%c0_14, %c0_15] : memref<64x128xf32, #tpu.memory_space<vmem>>, vector<64x128xf32>
    %c0_16 = arith.constant 0 : index
    %c0_17 = arith.constant 0 : index
    %22 = vector.load %arg7[%c0_16, %c0_17] : memref<128x2xf32, #tpu.memory_space<vmem>>, vector<128x2xf32>
    %c0_18 = arith.constant 0 : index
    %c0_19 = arith.constant 0 : index
    %23 = vector.load %arg9[%c0_18, %c0_19] : memref<64x2xf32, #tpu.memory_space<vmem>>, vector<64x2xf32>
    %cst_20 = arith.constant dense<0.000000e+00> : vector<128x256xf32>
    %24 = tpu.matmul %20, %19, %cst_20 {dimension_numbers = #tpu.dot_dimension_numbers<[1], [0], [0], [1], [0, 0, 1, 1], [], []>} : vector<128x64xf32>, vector<64x256xf32>, vector<128x256xf32> -> vector<128x256xf32>
    %25 = vector.extract_strided_slice %22 {offsets = [0, 0], sizes = [128, 1], strides = [1, 1]} : vector<128x2xf32> to vector<128x1xf32>
    %26 = vector.broadcast %25 : vector<128x1xf32> to vector<128x256xf32>
    %27 = arith.mulf %24, %26 : vector<128x256xf32>
    %28 = vector.extract_strided_slice %22 {offsets = [0, 1], sizes = [128, 1], strides = [1, 1]} : vector<128x2xf32> to vector<128x1xf32>
    %29 = vector.broadcast %28 : vector<128x1xf32> to vector<128x256xf32>
    %30 = arith.addf %27, %29 : vector<128x256xf32>
    %31 = arith.negf %30 : vector<128x256xf32>
    %32 = math.exp %31 : vector<128x256xf32>
    %cst_21 = arith.constant 1.000000e+00 : f32
    %33 = vector.broadcast %cst_21 : f32 to vector<128x256xf32>
    %34 = arith.addf %33, %32 : vector<128x256xf32>
    %35 = arith.divf %33, %34 : vector<128x256xf32>
    %36 = arith.mulf %30, %35 : vector<128x256xf32>
    %cst_22 = arith.constant dense<0.000000e+00> : vector<64x256xf32>
    %37 = tpu.matmul %21, %36, %cst_22 {dimension_numbers = #tpu.dot_dimension_numbers<[1], [0], [0], [1], [0, 0, 1, 1], [], []>} : vector<64x128xf32>, vector<128x256xf32>, vector<64x256xf32> -> vector<64x256xf32>
    %38 = vector.extract_strided_slice %23 {offsets = [0, 0], sizes = [64, 1], strides = [1, 1]} : vector<64x2xf32> to vector<64x1xf32>
    %39 = vector.broadcast %38 : vector<64x1xf32> to vector<64x256xf32>
    %40 = arith.mulf %37, %39 : vector<64x256xf32>
    %41 = vector.extract_strided_slice %23 {offsets = [0, 1], sizes = [64, 1], strides = [1, 1]} : vector<64x2xf32> to vector<64x1xf32>
    %42 = vector.broadcast %41 : vector<64x1xf32> to vector<64x256xf32>
    %43 = arith.addf %40, %42 : vector<64x256xf32>
    %44 = arith.addf %19, %43 : vector<64x256xf32>
    %c0_23 = arith.constant 0 : index
    %c0_24 = arith.constant 0 : index
    %45 = vector.load %arg10[%c0_23, %c0_24] : memref<64x256xf32, #tpu.memory_space<vmem>>, vector<64x256xf32>
    tpu.vector_store %arg10[%c0_23, %c0_24], %44 {strides = array<i32>} : memref<64x256xf32, #tpu.memory_space<vmem>>, vector<64x256xf32>,
    return
  }
  func.func @transform_0(%arg0: i32) -> (i32, i32) {
    %c0_i32 = arith.constant 0 : i32
    %c0_i32_0 = arith.constant 0 : i32
    return %arg0, %c0_i32 : i32, i32
  }
  func.func @transform_1(%arg0: i32) -> (i32, i32) {
    %c0_i32 = arith.constant 0 : i32
    %c0_i32_0 = arith.constant 0 : i32
    return %arg0, %c0_i32 : i32, i32
  }
  func.func @transform_2(%arg0: i32) -> (i32, i32) {
    %c0_i32 = arith.constant 0 : i32
    %c0_i32_0 = arith.constant 0 : i32
    return %arg0, %c0_i32 : i32, i32
  }
  func.func @transform_3(%arg0: i32) -> (i32, i32) {
    %c0_i32 = arith.constant 0 : i32
    %c0_i32_0 = arith.constant 0 : i32
    %c0_i32_1 = arith.constant 0 : i32
    return %c0_i32, %c0_i32_0 : i32, i32
  }
  func.func @transform_4(%arg0: i32) -> (i32, i32) {
    %c0_i32 = arith.constant 0 : i32
    %c0_i32_0 = arith.constant 0 : i32
    %c0_i32_1 = arith.constant 0 : i32
    return %c0_i32, %c0_i32_0 : i32, i32
  }
  func.func @transform_5(%arg0: i32) -> (i32, i32) {
    %c0_i32 = arith.constant 0 : i32
    %c0_i32_0 = arith.constant 0 : i32
    %c0_i32_1 = arith.constant 0 : i32
    return %c0_i32, %c0_i32_0 : i32, i32
  }
  func.func @transform_6(%arg0: i32) -> (i32, i32) {
    %c0_i32 = arith.constant 0 : i32
    %c0_i32_0 = arith.constant 0 : i32
    %c0_i32_1 = arith.constant 0 : i32
    return %c0_i32, %c0_i32_0 : i32, i32
  }
  func.func @transform_7(%arg0: i32) -> (i32, i32) {
    %c0_i32 = arith.constant 0 : i32
    %c0_i32_0 = arith.constant 0 : i32
    %c0_i32_1 = arith.constant 0 : i32
    return %c0_i32, %c0_i32_0 : i32, i32
  }
  func.func @transform_8(%arg0: i32) -> (i32, i32) {
    %c0_i32 = arith.constant 0 : i32
    %c0_i32_0 = arith.constant 0 : i32
    %c0_i32_1 = arith.constant 0 : i32
    return %c0_i32, %c0_i32_0 : i32, i32
  }
  func.func @transform_9(%arg0: i32) -> (i32, i32) {
    %c0_i32 = arith.constant 0 : i32
    %c0_i32_0 = arith.constant 0 : i32
    return %arg0, %c0_i32 : i32, i32
  }
}

</mosaic_0001>

<bundles_post_ra>
// kernel: tpu_custom_call.1
= control target key start
LH: loop header
LB: loop body
LE: loop exit
PB: predicated region body
PF: predicated region fallthrough
CT: control target
= control target key end

     0   :  { %s2881_s0 = inlined_call_operand.vmem [shape: f32[64,256], index: 0, kind: input, shape index: {}]   ;;  %s2882_s1 = inlined_call_operand.vmem [shape: f32[64,32], index: 1, kind: input, shape index: {}]   ;;  %s2883_s2 = inlined_call_operand.vmem [shape: f32[64,32], index: 2, kind: input, shape index: {}]   ;;  %s2884_s3 = inlined_call_operand.vmem [shape: f32[256,32], index: 3, kind: input, shape index: {}]   ;;  %s2885_s4 = inlined_call_operand.vmem [shape: f32[32,512], index: 4, kind: input, shape index: {}]   ;;  %s2886_s5 = inlined_call_operand.vmem [shape: f32[128,64], index: 5, kind: input, shape index: {}]   ;;  %s2887_s6 = inlined_call_operand.vmem [shape: f32[128,2], index: 6, kind: input, shape index: {}]   ;;  %s2888_s7 = inlined_call_operand.vmem [shape: f32[64,128], index: 7, kind: input, shape index: {}]   ;;  %s2889_s8 = inlined_call_operand.vmem [shape: f32[64,2], index: 8, kind: input, shape index: {}]   ;;  %s2890_s9 = inlined_call_operand.hbm [shape: f32[64,256], index: 9, kind: output, shape index: {}]  }
   0x1   :  { %v65_v0 = vld [vmem:[%s2884_s3 + $0x80] sm:$0xff]  ;;  %v66_v1 = vld [vmem:[%s2884_s3 + $0x88] sm:$0xff]  ;;  %v67_v5 = vld [vmem:[%s2884_s3 + $0x90] sm:$0xff] }
   0x2   :  { %v49_v2 = vld [vmem:[%s2884_s3] sm:$0xff]  ;;  %v1664_v3 = vpack.c.bf16 %v66_v1, %v65_v0  ;;  %v50_v4 = vld [vmem:[%s2884_s3 + $0x8] sm:$0xff]  ;;  %v68_v6 = vld [vmem:[%s2884_s3 + $0x98] sm:$0xff] }
   0x3   :  { %v1666_v7 = vpack.c.bf16 %v50_v4, %v49_v2  ;;  %v1668_v8 = vpack.c.bf16 %v68_v6, %v67_v5  ;;  %v51_v9 = vld [vmem:[%s2884_s3 + $0x10] sm:$0xff]  ;;  %v52_v10 = vld [vmem:[%s2884_s3 + $0x18] sm:$0xff]  ;;  %v69_v11 = vld [vmem:[%s2884_s3 + $0xa0] sm:$0xff] }
   0x4   :  { %1665 = vmatprep.subr.bf16.mxu0 %v1664_v3  ;;  %v70_v12 = vld [vmem:[%s2884_s3 + $0xa8] sm:$0xff]  ;;  %v1670_v13 = vpack.c.bf16 %v52_v10, %v51_v9  ;;  %v53_v15 = vld [vmem:[%s2884_s3 + $0x20] sm:$0xff]  ;;  %v71_v17 = vld [vmem:[%s2884_s3 + $0xb0] sm:$0xff] }
   0x5   :  { %1667 = vmatpush3.bf16.msra.mxu0 %v1666_v7  ;;  %v1672_v14 = vpack.c.bf16 %v70_v12, %v69_v11  ;;  %v54_v16 = vld [vmem:[%s2884_s3 + $0x28] sm:$0xff]  ;;  %v72_v18 = vld [vmem:[%s2884_s3 + $0xb8] sm:$0xff]  ;;  %v55_v21 = vld [vmem:[%s2884_s3 + $0x30] sm:$0xff] }
   0x6   :  { %1669 = vmatprep.subr.bf16.mxu0 %v1668_v8  ;;  %v1674_v19 = vpack.c.bf16 %v54_v16, %v53_v15  ;;  %v1676_v20 = vpack.c.bf16 %v72_v18, %v71_v17  ;;  %v56_v22 = vld [vmem:[%s2884_s3 + $0x38] sm:$0xff]  ;;  %v73_v23 = vld [vmem:[%s2884_s3 + $0xc0] sm:$0xff]  ;;  %v74_v24 = vld [vmem:[%s2884_s3 + $0xc8] sm:$0xff] }
   0x7   :  { %v2085_v25 = vld [vmem:[%s2881_s0 + $0x8] sm:$0xff]  ;;  %v1678_v26 = vpack.c.bf16 %v56_v22, %v55_v21  ;;  %v1680_v27 = vpack.c.bf16 %v74_v24, %v73_v23  ;;  %v57_v28 = vld [vmem:[%s2884_s3 + $0x40] sm:$0xff]  ;;  %v75_v30 = vld [vmem:[%s2884_s3 + $0xd0] sm:$0xff] }
   0x8   :  { %145 = vmatprep.mubr.f32.mxu0 %v2085_v25  ;;  %v58_v29 = vld [vmem:[%s2884_s3 + $0x48] sm:$0xff]  ;;  %v76_v31 = vld [vmem:[%s2884_s3 + $0xd8] sm:$0xff] }
   0x9   :  { %1671 = vmatpush3.bf16.msra.mxu0 %v1670_v13  ;;  %v1682_v32 = vpack.c.bf16 %v58_v29, %v57_v28 }
   0xa   :  { %1673 = vmatprep.subr.bf16.mxu0 %v1672_v14 }
   0xd   :  { %1675 = vmatpush3.bf16.msra.mxu0 %v1674_v19 }
   0xe   :  { %1677 = vmatprep.subr.bf16.mxu0 %v1676_v20 }
  0x11   :  { %1679 = vmatpush3.bf16.msra.mxu0 %v1678_v26 }
  0x12   :  { %14 = vsyncpa [#allocation3], 0  ;;  %1681 = vmatprep.subr.bf16.mxu0 %v1680_v27  ;;  %v1684_v33 = vpack.c.bf16 %v76_v31, %v75_v30  ;;  %v59_v34 = vld [vmem:[%s2884_s3 + $0x50] sm:$0xff]  ;;  %v60_v35 = vld [vmem:[%s2884_s3 + $0x58] sm:$0xff]  ;;  %v1972_v12 = vmov 0.0   ;;  %vm282_vm0 = vcmask 261120  }
  0x13   :  { %v77_v36 = vld [vmem:[%s2884_s3 + $0xe0] sm:$0xff]  ;;  %v78_v37 = vld [vmem:[%s2884_s3 + $0xe8] sm:$0xff]  ;;  %v1686_v38 = vpack.c.bf16 %v60_v35, %v59_v34  ;;  %v79_v42 = vld [vmem:[%s2884_s3 + $0xf0] sm:$0xff]  ;;  %371 = vmatprep.mubr.f32.mxu1 %v1972_v12  ;;  %vm629_vm1 = vcmask 523264  }
  0x14   :  { %v1688_v39 = vpack.c.bf16 %v78_v37, %v77_v36  ;;  %v61_v40 = vld [vmem:[%s2884_s3 + $0x60] sm:$0xff]  ;;  %v62_v41 = vld [vmem:[%s2884_s3 + $0x68] sm:$0xff]  ;;  %v80_v43 = vld [vmem:[%s2884_s3 + $0xf8] sm:$0xff] }
  0x15   :  { %1683 = vmatpush3.bf16.msra.mxu0 %v1682_v32  ;;  %v1690_v44 = vpack.c.bf16 %v62_v41, %v61_v40  ;;  %v1692_v45 = vpack.c.bf16 %v80_v43, %v79_v42  ;;  %v63_v46 = vld [vmem:[%s2884_s3 + $0x70] sm:$0xff]  ;;  %v64_v47 = vld [vmem:[%s2884_s3 + $0x78] sm:$0xff]  ;;  %v2133_v49 = vld [vmem:[%s2881_s0] sm:$0xff] }
  0x16   :  { %1685 = vmatprep.subr.bf16.mxu0 %v1684_v33  ;;  %v1694_v48 = vpack.c.bf16 %v64_v47, %v63_v46  ;;  %v2138_v50 = vld [vmem:[%s2881_s0 + $0x18] sm:$0xff]  ;;  %v2145_v51 = vld [vmem:[%s2881_s0 + $0x10] sm:$0xff]  ;;  %v2150_v52 = vld [vmem:[%s2881_s0 + $0x28] sm:$0xff] }
  0x17   :  { %v2157_v53 = vld [vmem:[%s2881_s0 + $0x20] sm:$0xff]  ;;  %v2162_v54 = vld [vmem:[%s2881_s0 + $0x38] sm:$0xff]  ;;  %v2169_v55 = vld [vmem:[%s2881_s0 + $0x30] sm:$0xff] }
  0x18   :  { %v2174_v56 = vld [vmem:[%s2881_s0 + $0x48] sm:$0xff]  ;;  %v2181_v57 = vld [vmem:[%s2881_s0 + $0x40] sm:$0xff]  ;;  %v2186_v58 = vld [vmem:[%s2881_s0 + $0x58] sm:$0xff] }
  0x19   :  { %1687 = vmatpush3.bf16.msra.mxu0 %v1686_v38  ;;  %v2193_v59 = vld [vmem:[%s2881_s0 + $0x50] sm:$0xff]  ;;  %v2198_v60 = vld [vmem:[%s2881_s0 + $0x68] sm:$0xff]  ;;  %v2205_v61 = vld [vmem:[%s2881_s0 + $0x60] sm:$0xff] }
  0x1a   :  { %1689 = vmatprep.subr.bf16.mxu0 %v1688_v39  ;;  %v2210_v62 = vld [vmem:[%s2881_s0 + $0x78] sm:$0xff]  ;;  %v2217_v63 = vld [vmem:[%s2881_s0 + $0x70] sm:$0xff]  ;;  %v267_v0 = vld [vmem:[%s2885_s4 + $0x8] sm:$0xff] }
  0x1b   :  { %v271_v1 = vld [vmem:[%s2885_s4 + $0x28] sm:$0xff]  ;;  %v266_v3 = vld [vmem:[%s2885_s4] sm:$0xff]  ;;  %v269_v13 = vld [vmem:[%s2885_s4 + $0x18] sm:$0xff] }
  0x1c   :  { %v1696_v2 = vpack.c.bf16 %v271_v1, %v267_v0  ;;  %v270_v4 = vld [vmem:[%s2885_s4 + $0x20] sm:$0xff]  ;;  %v275_v6 = vld [vmem:[%s2885_s4 + $0x48] sm:$0xff]  ;;  %v273_v14 = vld [vmem:[%s2885_s4 + $0x38] sm:$0xff] }
  0x1d   :  { %1691 = vmatpush3.bf16.msra.mxu0 %v1690_v44  ;;  %v1698_v5 = vpack.c.bf16 %v270_v4, %v266_v3  ;;  %v279_v7 = vld [vmem:[%s2885_s4 + $0x68] sm:$0xff]  ;;  %v274_v9 = vld [vmem:[%s2885_s4 + $0x40] sm:$0xff]  ;;  %v1704_v15 = vpack.c.bf16 %v273_v14, %v269_v13  ;;  %v188_v33 = vld [vmem:[%s2882_s1 + $0x10] sm:$0xff] }
  0x1e   :  { %1693 = vmatprep.subr.bf16.mxu0 %v1692_v45  ;;  %1697 = vmatprep.subr.bf16.mxu1 %v1696_v2  ;;  %v1700_v8 = vpack.c.bf16 %v279_v7, %v275_v6  ;;  %v278_v10 = vld [vmem:[%s2885_s4 + $0x60] sm:$0xff]  ;;  %v187_v24 = vld [vmem:[%s2882_s1 + $0x8] sm:$0xff]  ;;  %v204_v36 = vld [vmem:[%s2883_s2 + $0x10] sm:$0xff] }
  0x1f   :  { %1699 = vmatpush1.bf16.msra.mxu1 %v1698_v5  ;;  %v1702_v11 = vpack.c.bf16 %v278_v10, %v274_v9  ;;  %v186_v18 = vld [vmem:[%s2882_s1] sm:$0xff]  ;;  %v203_v28 = vld [vmem:[%s2883_s2 + $0x8] sm:$0xff]  ;;  %v189_v41 = vld [vmem:[%s2882_s1 + $0x18] sm:$0xff] }
  0x20   :  { %1701 = vmatprep.subr.bf16.mxu1 %v1700_v8  ;;  %v202_v20 = vld [vmem:[%s2883_s2] sm:$0xff]  ;;  %v205_v44 = vld [vmem:[%s2883_s2 + $0x18] sm:$0xff]  ;;  %v191_v10 = vld [vmem:[%s2882_s1 + $0x28] sm:$0xff] }
  0x21   :  { %1695 = vmatpush3.bf16.msra.mxu0 %v1694_v48  ;;  %v190_v0 = vld [vmem:[%s2882_s1 + $0x20] sm:$0xff]  ;;  %v207_v14 = vld [vmem:[%s2883_s2 + $0x28] sm:$0xff] }
  0x22   :  { %v206_v3 = vld [vmem:[%s2883_s2 + $0x20] sm:$0xff] }
  0x23   :  { %1703 = vmatpush1.bf16.msra.mxu1 %v1702_v11 }
  0x24   :  { %146 = vmatmul.mubr.f32.vlgmr.msra.gmra.mrb[0].mxu0 %v2133_v49  ;;  %1705 = vmatprep.subr.bf16.mxu1 %v1704_v15 }
  0x25   :  { %150 = vmatprep.mubr.f32.mxu0 %v2138_v50 }
  0x28   :  { %151 = vmatmul.mubr.f32.gmra.mrb[2].mxu0 %v2145_v51 }
  0x29   :  { %155 = vmatprep.mubr.f32.mxu0 %v2150_v52 }
  0x2c   :  { %156 = vmatmul.mubr.f32.gmra.mrb[4].mxu0 %v2157_v53 }
  0x2d   :  { %160 = vmatprep.mubr.f32.mxu0 %v2162_v54 }
  0x30   :  { %161 = vmatmul.mubr.f32.gmra.mrb[6].mxu0 %v2169_v55 }
  0x31   :  { %165 = vmatprep.mubr.f32.mxu0 %v2174_v56 }
  0x34   :  { %166 = vmatmul.mubr.f32.gmra.mrb[8].mxu0 %v2181_v57 }
  0x35   :  { %170 = vmatprep.mubr.f32.mxu0 %v2186_v58 }
  0x38   :  { %171 = vmatmul.mubr.f32.gmra.mrb[10].mxu0 %v2193_v59 }
  0x39   :  { %175 = vmatprep.mubr.f32.mxu0 %v2198_v60 }
  0x3c   :  { %176 = vmatmul.mubr.f32.gmra.mrb[12].mxu0 %v2205_v61 }
  0x3d   :  { %180 = vmatprep.mubr.f32.mxu0 %v2210_v62 }
  0x40   :  { %181 = vmatmul.mubr.f32.gmra.mrb[14].mxu0 %v2217_v63 }
  0x41   :  { %742 = vmatprep.mubr.f32.mxu0 %v1972_v12 }
  0xf7   :  { %v1640_v16 = vpop.f32.mrb[0].mxu0 }
  0xf8   :  { %v1641_v17 = vpop.f32.mrb[1].mxu0 }
  0xf9   :  { %v1642_v19 = vadd.f32 %v1641_v17, %v1640_v16 }
  0xfb   :  { %v194_v21 = vmul.f32 %v1642_v19, %v186_v18  ;;  %v1643_v22 = vpop.f32.mrb[2].mxu0 }
  0xfc   :  { %v1644_v23 = vpop.f32.mrb[3].mxu0 }
  0xfd   :  { %v210_v26 = vadd.f32 %v202_v20, %v194_v21  ;;  %v1645_v27 = vadd.f32 %v1644_v23, %v1643_v22  ;;  %v192_v21 = vld [vmem:[%s2882_s1 + $0x30] sm:$0xff] }
  0xff   :  { %v1536_v29 = vmul.f32 -1.442695, %v210_v26  ;;  %v195_v30 = vmul.f32 %v1645_v27, %v187_v24  ;;  %v1646_v31 = vpop.f32.mrb[4].mxu0  ;;  %v208_v24 = vld [vmem:[%s2883_s2 + $0x30] sm:$0xff] }
 0x100   :  { %v1647_v32 = vpop.f32.mrb[5].mxu0 }
 0x101   :  { %1788 = vpow2.f32 %v1536_v29  ;;  %v211_v34 = vadd.f32 %v203_v28, %v195_v30  ;;  %v1648_v35 = vadd.f32 %v1647_v32, %v1646_v31  ;;  %v268_v30 = vld [vmem:[%s2885_s4 + $0x10] sm:$0xff] }
 0x102   :  { %v272_v31 = vld [vmem:[%s2885_s4 + $0x30] sm:$0xff] }
 0x103   :  { %v1537_v37 = vmul.f32 -1.442695, %v211_v34  ;;  %v196_v38 = vmul.f32 %v1648_v35, %v188_v33  ;;  %v1649_v39 = vpop.f32.mrb[6].mxu0  ;;  %v193_v34 = vld [vmem:[%s2882_s1 + $0x38] sm:$0xff] }
 0x104   :  { %v1650_v40 = vpop.f32.mrb[7].mxu0  ;;  %v277_v35 = vld [vmem:[%s2885_s4 + $0x58] sm:$0xff] }
 0x105   :  { %1790 = vpow2.f32 %v1537_v37  ;;  %v212_v42 = vadd.f32 %v204_v36, %v196_v38  ;;  %v1651_v43 = vadd.f32 %v1650_v40, %v1649_v39  ;;  %v281_v36 = vld [vmem:[%s2885_s4 + $0x78] sm:$0xff]  ;;  %v1706_v40 = vpack.c.bf16 %v272_v31, %v268_v30 }
 0x106   :  { %v209_v39 = vld [vmem:[%s2883_s2 + $0x38] sm:$0xff] }
 0x107   :  { %v1538_v45 = vmul.f32 -1.442695, %v212_v42  ;;  %v197_v46 = vmul.f32 %v1651_v43, %v189_v41  ;;  %v1652_v47 = vpop.f32.mrb[8].mxu0  ;;  %v608_v31 = vld [vmem:[%s2887_s6 + $0x18] sm:$0xff] }
 0x108   :  { %v1653_v48 = vpop.f32.mrb[9].mxu0 }
 0x109   :  { %1792 = vpow2.f32 %v1538_v45  ;;  %v213_v1 = vadd.f32 %v205_v44, %v197_v46  ;;  %v1654_v2 = vadd.f32 %v1653_v48, %v1652_v47  ;;  %v1708_v44 = vpack.c.bf16 %v281_v36, %v277_v35  ;;  %v276_v45 = vld [vmem:[%s2885_s4 + $0x50] sm:$0xff] }
 0x10a   :  { %v280_v46 = vld [vmem:[%s2885_s4 + $0x70] sm:$0xff] }
 0x10b   :  { %v1789_v4 = vpop.eup %1788  ;;  %v1539_v5 = vmul.f32 -1.442695, %v213_v1  ;;  %v198_v6 = vmul.f32 %v1654_v2, %v190_v0  ;;  %v1655_v7 = vpop.f32.mrb[10].mxu0  ;;  %v1710_v1 = vpack.c.bf16 %v280_v46, %v276_v45 }
 0x10c   :  { %v242_v8 = vadd.f32 1.0, %v1789_v4  ;;  %v1656_v9 = vpop.f32.mrb[11].mxu0 }
 0x10d   :  { %1794 = vpow2.f32 %v1539_v5  ;;  %v214_v11 = vadd.f32 %v206_v3, %v198_v6  ;;  %v1657_v13 = vadd.f32 %v1656_v9, %v1655_v7 }
 0x10e   :  { %1796 = vrcp.f32 %v242_v8 }
 0x10f   :  { %v1791_v15 = vpop.eup %1790  ;;  %v1540_v16 = vmul.f32 -1.442695, %v214_v11  ;;  %v199_v17 = vmul.f32 %v1657_v13, %v191_v10  ;;  %v1658_v18 = vpop.f32.mrb[12].mxu0 }
 0x110   :  { %v243_v19 = vadd.f32 1.0, %v1791_v15  ;;  %v1659_v20 = vpop.f32.mrb[13].mxu0 }
 0x111   :  { %1798 = vpow2.f32 %v1540_v16  ;;  %v215_v22 = vadd.f32 %v207_v14, %v199_v17  ;;  %v1660_v23 = vadd.f32 %v1659_v20, %v1658_v18 }
 0x112   :  { %1800 = vrcp.f32 %v243_v19 }
 0x113   :  { %v1793_v26 = vpop.eup %1792  ;;  %v1541_v27 = vmul.f32 -1.442695, %v215_v22  ;;  %v200_v28 = vmul.f32 %v1660_v23, %v192_v21  ;;  %v1661_v29 = vpop.f32.mrb[14].mxu0  ;;  %v1973_v21 = vmov 1   ;;  %v605_v22 = vld [vmem:[%s2887_s6] sm:$0xff] }
 0x114   :  { %v244_v32 = vadd.f32 1.0, %v1793_v26  ;;  %v1662_v33 = vpop.f32.mrb[15].mxu0  ;;  %1766 = vset.pattern.permute.xlu1 %v1973_v21  ;;  %1768 = vset.pattern.permute.xlu0 %v1973_v21  ;;  %v606_v26 = vld [vmem:[%s2887_s6 + $0x8] sm:$0xff] }
 0x115   :  { %1802 = vpow2.f32 %v1541_v27  ;;  %v216_v37 = vadd.f32 %v208_v24, %v200_v28  ;;  %v1663_v38 = vadd.f32 %v1662_v33, %v1661_v29  ;;  %952 = vperm.xlu1 %1766, %v605_v22   ;;  %v607_v27 = vld [vmem:[%s2887_s6 + $0x10] sm:$0xff] }
 0x116   :  { %1804 = vrcp.f32 %v244_v32  ;;  %960 = vperm.xlu0 %1768, %v607_v27   ;;  %v611_v29 = vld [vmem:[%s2887_s6 + $0x30] sm:$0xff]  ;;  %v1974_v32 = vmov 0  }
 0x117   :  { %v1795_v41 = vpop.eup %1794  ;;  %v1542_v42 = vmul.f32 -1.442695, %v216_v37  ;;  %v201_v43 = vmul.f32 %v1663_v38, %v193_v34  ;;  %v615_v34 = vld [vmem:[%s2887_s6 + $0x50] sm:$0xff]  ;;  %v609_v38 = vld [vmem:[%s2887_s6 + $0x20] sm:$0xff] }
 0x118   :  { %v1797_v47 = vpop.eup %1796  ;;  %v245_v48 = vadd.f32 1.0, %v1795_v41 }
 0x119   :  { %1806 = vpow2.f32 %v1542_v42  ;;  %v217_v0 = vadd.f32 %v209_v39, %v201_v43  ;;  %1544 = vmatmul.mubr.msk.f32.vlgmr.msra.gmra.mrb[0].mxu1 %vm282_vm0, %v1797_v47  ;;  %956 = vperm.xlu1 %1766, %v606_v26  }
 0x11a   :  { %1808 = vrcp.f32 %v245_v48  ;;  %377 = vmatprep.mubr.f32.mxu1 %v1972_v12  ;;  %1707 = vmatpush1.bf16.msra.mxu1 %v1706_v40 }
 0x11b   :  { %v1799_v2 = vpop.eup %1798  ;;  %v1543_v3 = vmul.f32 -1.442695, %v217_v0  ;;  %1709 = vmatprep.subr.bf16.mxu1 %v1708_v44  ;;  %976 = vperm.xlu0 %1768, %v611_v29   ;;  %v610_v44 = vld [vmem:[%s2887_s6 + $0x28] sm:$0xff]  ;;  %v612_v0 = vld [vmem:[%s2887_s6 + $0x38] sm:$0xff] }
 0x11c   :  { %v1801_v4 = vpop.eup %1800  ;;  %v246_v5 = vadd.f32 1.0, %v1799_v2 }
 0x11d   :  { %1810 = vpow2.f32 %v1543_v3  ;;  %1545 = vmatmul.mubr.msk.f32.gmra.mrb[2].mxu1 %vm282_vm0, %v1801_v4  ;;  %1767 = vset.pattern.permute.xlu1 %v1974_v32 }
 0x11e   :  { %1812 = vrcp.f32 %v246_v5  ;;  %383 = vmatprep.mubr.f32.mxu1 %v1972_v12  ;;  %1711 = vmatpush1.bf16.msra.mxu1 %v1710_v1  ;;  %v614_v5 = vld [vmem:[%s2887_s6 + $0x48] sm:$0xff] }
 0x11f   :  { %v1803_v6 = vpop.eup %1802  ;;  %856 = vperm.xlu1 %1767, %v608_v31   ;;  %992 = vperm.xlu0 %1768, %v615_v34  }
 0x120   :  { %v1805_v7 = vpop.eup %1804  ;;  %v247_v8 = vadd.f32 1.0, %v1803_v6 }
 0x121   :  { %1546 = vmatmul.mubr.msk.f32.gmra.mrb[4].mxu1 %vm282_vm0, %v1805_v7 }
 0x122   :  { %1814 = vrcp.f32 %v247_v8  ;;  %389 = vmatprep.mubr.f32.mxu1 %v1972_v12 }
 0x123   :  { %v1807_v9 = vpop.eup %1806  ;;  %1769 = vset.pattern.permute.xlu1 %v1973_v21  ;;  %1777 = vset.pattern.permute.xlu0 %v1974_v32 }
 0x124   :  { %v1809_v10 = vpop.eup %1808  ;;  %v248_v11 = vadd.f32 1.0, %v1807_v9  ;;  %964 = vperm.xlu1 %1769, %v608_v31   ;;  %841 = vperm.xlu0 %1777, %v605_v22  }
 0x125   :  { %1547 = vmatmul.mubr.msk.f32.gmra.mrb[6].mxu1 %vm282_vm0, %v1809_v10 }
 0x126   :  { %1816 = vrcp.f32 %v248_v11  ;;  %395 = vmatprep.mubr.f32.mxu1 %v1972_v12 }
 0x127   :  { %v1811_v13 = vpop.eup %1810 }
 0x128   :  { %v1813_v14 = vpop.eup %1812  ;;  %v249_v15 = vadd.f32 1.0, %v1811_v13  ;;  %1770 = vset.pattern.permute.xlu1 %v1974_v32  ;;  %846 = vperm.xlu0 %1777, %v606_v26  }
 0x129   :  { %1548 = vmatmul.mubr.msk.f32.gmra.mrb[8].mxu1 %vm282_vm0, %v1813_v14  ;;  %861 = vperm.xlu1 %1770, %v609_v38  }
 0x12a   :  { %1818 = vrcp.f32 %v249_v15  ;;  %401 = vmatprep.mubr.f32.mxu1 %v1972_v12 }
 0x12c   :  { %v1815_v16 = vpop.eup %1814  ;;  %851 = vperm.xlu0 %1777, %v607_v27  }
 0x12d   :  { %1549 = vmatmul.mubr.msk.f32.gmra.mrb[10].mxu1 %vm282_vm0, %v1815_v16  ;;  %1771 = vset.pattern.permute.xlu1 %v1973_v21 }
 0x12e   :  { %407 = vmatprep.mubr.f32.mxu1 %v1972_v12  ;;  %968 = vperm.xlu1 %1771, %v609_v38   ;;  %v619_v38 = vld [vmem:[%s2887_s6 + $0x70] sm:$0xff] }
 0x130   :  { %v1817_v17 = vpop.eup %1816  ;;  %866 = vperm.xlu0 %1777, %v610_v44  }
 0x131   :  { %1550 = vmatmul.mubr.msk.f32.gmra.mrb[12].mxu1 %vm282_vm0, %v1817_v17 }
 0x132   :  { %413 = vmatprep.mubr.f32.mxu1 %v1972_v12  ;;  %972 = vperm.xlu1 %1771, %v610_v44  }
 0x134   :  { %v1819_v18 = vpop.eup %1818  ;;  %871 = vperm.xlu0 %1777, %v611_v29  }
 0x135   :  { %1551 = vmatmul.mubr.msk.f32.gmra.mrb[14].mxu1 %vm282_vm0, %v1819_v18 }
 0x136   :  { %484 = vmatprep.mubr.f32.mxu1 %v1972_v12  ;;  %1772 = vset.pattern.permute.xlu1 %v1974_v32 }
 0x137   :  { %876 = vperm.xlu1 %1772, %v612_v0  }
 0x138   :  { %886 = vperm.xlu0 %1777, %v614_v5  }
 0x139   :  { %1552 = vmatmul.mubr.msk.f32.vlgmr.msra.gmra.mrb[16].mxu1 %vm282_vm0, %v1797_v47 }
 0x13a   :  { %490 = vmatprep.mubr.f32.mxu1 %v1972_v12 }
 0x13b   :  { %1773 = vset.pattern.permute.xlu1 %v1973_v21 }
 0x13c   :  { %980 = vperm.xlu1 %1773, %v612_v0   ;;  %891 = vperm.xlu0 %1777, %v615_v34  }
 0x13d   :  { %1553 = vmatmul.mubr.msk.f32.gmra.mrb[18].mxu1 %vm282_vm0, %v1801_v4 }
 0x13e   :  { %496 = vmatprep.mubr.f32.mxu1 %v1972_v12 }
 0x140   :  { %1774 = vset.pattern.permute.xlu1 %v1974_v32 }
 0x141   :  { %1554 = vmatmul.mubr.msk.f32.gmra.mrb[20].mxu1 %vm282_vm0, %v1805_v7 }
 0x142   :  { %502 = vmatprep.mubr.f32.mxu1 %v1972_v12 }
 0x145   :  { %1555 = vmatmul.mubr.msk.f32.gmra.mrb[22].mxu1 %vm282_vm0, %v1809_v10 }
 0x146   :  { %508 = vmatprep.mubr.f32.mxu1 %v1972_v12 }
 0x149   :  { %1556 = vmatmul.mubr.msk.f32.gmra.mrb[24].mxu1 %vm282_vm0, %v1813_v14 }
 0x14a   :  { %514 = vmatprep.mubr.f32.mxu1 %v1972_v12 }
 0x14d   :  { %1557 = vmatmul.mubr.msk.f32.gmra.mrb[26].mxu1 %vm282_vm0, %v1815_v16 }
 0x14e   :  { %520 = vmatprep.mubr.f32.mxu1 %v1972_v12 }
 0x151   :  { %1558 = vmatmul.mubr.msk.f32.gmra.mrb[28].mxu1 %vm282_vm0, %v1817_v17 }
 0x152   :  { %526 = vmatprep.mubr.f32.mxu1 %v1972_v12 }
 0x155   :  { %1559 = vmatmul.mubr.msk.f32.gmra.mrb[30].mxu1 %vm282_vm0, %v1819_v18 }
 0x156   :  { %1335 = vmatprep.mubr.f32.mxu1 %v1972_v12 }
 0x1ec   :  { %v373_v19 = vpop.f32.mrb[0].mxu1 }
 0x1ed   :  { %v375_v20 = vpop.f32.mrb[1].mxu1 }
 0x1f0   :  { %v379_v23 = vpop.f32.mrb[2].mxu1 }
 0x1f1   :  { %v381_v24 = vpop.f32.mrb[3].mxu1 }
 0x1f4   :  { %v385_v28 = vpop.f32.mrb[4].mxu1 }
 0x1f5   :  { %v387_v30 = vpop.f32.mrb[5].mxu1 }
 0x1f8   :  { %v391_v33 = vpop.f32.mrb[6].mxu1 }
 0x1f9   :  { %v393_v35 = vpop.f32.mrb[7].mxu1 }
 0x1fc   :  { %v2371_v36 = vpop.f32.mrb[8].mxu1 }
 0x1fd   :  { %v2374_v37 = vpop.f32.mrb[9].mxu1 }
 0x200   :  { %v2380_v39 = vpop.f32.mrb[10].mxu1 }
 0x201   :  { %v2382_v40 = vpop.f32.mrb[11].mxu1 }
 0x204   :  { %v2385_v41 = vpop.f32.mrb[12].mxu1 }
 0x205   :  { %v2387_v42 = vpop.f32.mrb[13].mxu1 }
 0x208   :  { %v2390_v43 = vpop.f32.mrb[14].mxu1 }
 0x209   :  { %v2395_v45 = vpop.f32.mrb[15].mxu1 }
 0x20c   :  { %v486_v46 = vpop.f32.mrb[16].mxu1 }
 0x20d   :  { %v533_v47 = vmul.f32 %v486_v46, %v373_v19  ;;  %v488_v48 = vpop.f32.mrb[17].mxu1 }
 0x20e   :  { %v534_v1 = vmul.f32 %v488_v48, %v375_v20  ;;  %v613_v20 = vld [vmem:[%s2887_s6 + $0x40] sm:$0xff] }
 0x20f   :  { %v549_v8 = vadd.f32 1.0, %v533_v47  ;;  %881 = vperm.xlu1 %1774, %v613_v20  }
 0x210   :  { %v492_v2 = vpop.f32.mrb[18].mxu1  ;;  %v550_v6 = vadd.f32 1.0, %v534_v1 }
 0x211   :  { %v535_v3 = vmul.f32 %v492_v2, %v379_v23  ;;  %v494_v4 = vpop.f32.mrb[19].mxu1  ;;  %v2415_v19 = vmul.f32 %v549_v8, %v2133_v49  ;;  %v2428_v49 = vld [vmem:[%s2887_s6 + $0x68] sm:$0xff] }
 0x212   :  { %v536_v7 = vmul.f32 %v494_v4, %v381_v24  ;;  %v2409_v16 = vmul.f32 %v550_v6, %v2085_v25  ;;  %906 = vperm.xlu0 %1777, %v2428_v49  }
 0x213   :  { %v551_v9 = vadd.f32 1.0, %v535_v3  ;;  %1775 = vset.pattern.permute.xlu1 %v1973_v21 }
 0x214   :  { %v552_v10 = vadd.f32 1.0, %v536_v7  ;;  %v498_v11 = vpop.f32.mrb[20].mxu1  ;;  %984 = vperm.xlu1 %1775, %v613_v20  }
 0x215   :  { %v2406_v13 = vmul.f32 %v551_v9, %v2145_v51  ;;  %v537_v14 = vmul.f32 %v498_v11, %v385_v28  ;;  %v500_v15 = vpop.f32.mrb[21].mxu1 }
 0x216   :  { %v2412_v17 = vmul.f32 %v552_v10, %v2138_v50  ;;  %v538_v18 = vmul.f32 %v500_v15, %v387_v30  ;;  %911 = vperm.xlu0 %1777, %v619_v38  }
 0x217   :  { %v1714_v25 = vpack.c.bf16 %v2406_v13, %v2415_v19  ;;  %v553_v27 = vadd.f32 1.0, %v537_v14 }
 0x218   :  { %v504_v22 = vpop.f32.mrb[22].mxu1  ;;  %v1712_v51 = vpack.c.bf16 %v2412_v17, %v2409_v16  ;;  %v554_v50 = vadd.f32 1.0, %v538_v18  ;;  %988 = vperm.xlu1 %1775, %v614_v5  }
 0x219   :  { %v539_v23 = vmul.f32 %v504_v22, %v391_v33  ;;  %v506_v24 = vpop.f32.mrb[23].mxu1 }
 0x21a   :  { %v540_v26 = vmul.f32 %v506_v24, %v393_v35  ;;  %1713 = vmatprep.subr.bf16.mxu0 %v1712_v51  ;;  %v2439_v35 = vmul.f32 %v554_v50, %v2150_v52  ;;  %1782 = vset.pattern.permute.xlu0 %v1973_v21  ;;  %v585_v24 = vld [vmem:[%s2886_s5 + $0x20] sm:$0xff]  ;;  %v587_v50 = vld [vmem:[%s2886_s5 + $0x30] sm:$0xff] }
 0x21b   :  { %v555_v28 = vadd.f32 1.0, %v539_v23  ;;  %1715 = vmatpush1.bf16.msra.mxu0 %v1714_v25  ;;  %1008 = vperm.xlu0 %1782, %v619_v38   ;;  %v620_v25 = vld [vmem:[%s2887_s6 + $0x78] sm:$0xff] }
 0x21c   :  { %v556_v29 = vadd.f32 1.0, %v540_v26  ;;  %v510_v30 = vpop.f32.mrb[24].mxu1  ;;  %1776 = vset.pattern.permute.xlu1 %v1974_v32  ;;  %v584_v23 = vld [vmem:[%s2886_s5 + $0x18] sm:$0xff] }
 0x21d   :  { %v2432_v31 = vmul.f32 %v555_v28, %v2169_v55  ;;  %v541_v33 = vmul.f32 %v510_v30, %v2371_v36  ;;  %v512_v34 = vpop.f32.mrb[25].mxu1  ;;  %v2447_v55 = vmul.f32 %v553_v27, %v2157_v53  ;;  %v588_v26 = vld [vmem:[%s2886_s5 + $0x38] sm:$0xff]  ;;  %v590_v27 = vld [vmem:[%s2886_s5 + $0x48] sm:$0xff]  ;;  %v591_v28 = vld [vmem:[%s2886_s5 + $0x50] sm:$0xff] }
 0x21e   :  { %v2442_v44 = vmul.f32 %v556_v29, %v2162_v54  ;;  %v542_v46 = vmul.f32 %v512_v34, %v2374_v37  ;;  %v592_v29 = vld [vmem:[%s2886_s5 + $0x58] sm:$0xff]  ;;  %v593_v30 = vld [vmem:[%s2886_s5 + $0x60] sm:$0xff]  ;;  %v595_v34 = vld [vmem:[%s2886_s5 + $0x70] sm:$0xff] }
 0x21f   :  { %v1718_v52 = vpack.c.bf16 %v2432_v31, %v2447_v55  ;;  %v557_v1 = vadd.f32 1.0, %v541_v33  ;;  %1785 = vset.pattern.permute.xlu0 %v1974_v32  ;;  %v594_v33 = vld [vmem:[%s2886_s5 + $0x68] sm:$0xff]  ;;  %v596_v38 = vld [vmem:[%s2886_s5 + $0x78] sm:$0xff] }
 0x220   :  { %v516_v36 = vpop.f32.mrb[26].mxu1  ;;  %v1716_v47 = vpack.c.bf16 %v2442_v44, %v2439_v35  ;;  %v558_v0 = vadd.f32 1.0, %v542_v46  ;;  %v953_v46 = vpop.permute.xlu1 %952 }
 0x221   :  { %v543_v48 = vmul.f32 %v516_v36, %v2380_v39  ;;  %v518_v54 = vpop.f32.mrb[27].mxu1  ;;  %v616_v39 = vld [vmem:[%s2887_s6 + $0x58] sm:$0xff]  ;;  %v2471_v9 = vmul.f32 %v557_v1, %v2181_v57 }
 0x222   :  { %v544_v37 = vmul.f32 %v518_v54, %v2382_v40  ;;  %1717 = vmatprep.subr.bf16.mxu0 %v1716_v47  ;;  %v2464_v40 = vmul.f32 %v558_v0, %v2174_v56  ;;  %896 = vperm.xlu1 %1776, %v616_v39  }
 0x223   :  { %v559_v2 = vadd.f32 1.0, %v543_v48  ;;  %1719 = vmatpush1.bf16.msra.mxu0 %v1718_v52  ;;  %v961_v48 = vpop.permute.xlu0 %960 }
 0x224   :  { %v560_v53 = vadd.f32 1.0, %v544_v37  ;;  %v522_v3 = vpop.f32.mrb[28].mxu1  ;;  %v957_v36 = vpop.permute.xlu1 %956 }
 0x225   :  { %v2457_v4 = vmul.f32 %v559_v2, %v2193_v59  ;;  %v545_v6 = vmul.f32 %v522_v3, %v2385_v41  ;;  %v524_v7 = vpop.f32.mrb[29].mxu1 }
 0x226   :  { %v2467_v5 = vmul.f32 %v560_v53, %v2186_v58  ;;  %v546_v8 = vmul.f32 %v524_v7, %v2387_v42  ;;  %1778 = vset.pattern.permute.xlu1 %v1973_v21 }
 0x227   :  { %v1722_v10 = vpack.c.bf16 %v2457_v4, %v2471_v9  ;;  %v561_v57 = vadd.f32 1.0, %v545_v6  ;;  %996 = vperm.xlu1 %1778, %v616_v39   ;;  %v2591_v0 = vpop.permute.xlu0 %976 }
 0x228   :  { %v528_v59 = vpop.f32.mrb[30].mxu1  ;;  %v1720_v41 = vpack.c.bf16 %v2467_v5, %v2464_v40  ;;  %v562_v58 = vadd.f32 1.0, %v546_v8  ;;  %v857_v47 = vpop.permute.xlu1 %856 }
 0x229   :  { %v547_v56 = vmul.f32 %v528_v59, %v2390_v43  ;;  %v530_v11 = vpop.f32.mrb[31].mxu1  ;;  %v2492_v22 = vmul.f32 %v561_v57, %v2205_v61  ;;  %v582_v61 = vld [vmem:[%s2886_s5 + $0x8] sm:$0xff] }
 0x22a   :  { %v548_v42 = vmul.f32 %v530_v11, %v2395_v45  ;;  %1721 = vmatprep.subr.bf16.mxu0 %v1720_v41  ;;  %v2486_v20 = vmul.f32 %v562_v58, %v2198_v60  ;;  %v617_v45 = vld [vmem:[%s2887_s6 + $0x60] sm:$0xff] }
 0x22b   :  { %v563_v14 = vadd.f32 1.0, %v547_v56  ;;  %1723 = vmatpush1.bf16.msra.mxu0 %v1722_v10  ;;  %1779 = vset.pattern.permute.xlu1 %v1974_v32  ;;  %v581_v60 = vld [vmem:[%s2886_s5] sm:$0xff]  ;;  %v2595_v1 = vpop.permute.xlu0 %992 }
 0x22c   :  { %v564_v15 = vadd.f32 1.0, %v548_v42  ;;  %901 = vperm.xlu1 %1779, %v617_v45   ;;  %v965_v52 = vpop.permute.xlu1 %964  ;;  %v621_v58 = vld [vmem:[%s2889_s8] sm:$0xff]  ;;  %v2613_v42 = vld [vmem:[%s2889_s8 + $0x8] sm:$0xff] }
 0x22d   :  { %v2483_v18 = vmul.f32 %v563_v14, %v2217_v63  ;;  %1391 = vperm.xlu0 %1785, %v2613_v42  }
 0x22e   :  { %v2489_v43 = vmul.f32 %v564_v15, %v2210_v62  ;;  %v583_v62 = vld [vmem:[%s2886_s5 + $0x10] sm:$0xff] }
 0x22f   :  { %v1726_v63 = vpack.c.bf16 %v2483_v18, %v2492_v22  ;;  %v842_v53 = vpop.permute.xlu0 %841 }
 0x230   :  { %v1724_v51 = vpack.c.bf16 %v2489_v43, %v2486_v20  ;;  %1780 = vset.pattern.permute.xlu1 %v1973_v21  ;;  %v2589_v54 = vpop.permute.xlu1 %861 }
 0x231   :  { %1000 = vperm.xlu1 %1780, %v617_v45  }
 0x232   :  { %1725 = vmatprep.subr.bf16.mxu0 %v1724_v51 }
 0x233   :  { %1727 = vmatpush1.bf16.msra.mxu0 %v1726_v63  ;;  %v847_v59 = vpop.permute.xlu0 %846  ;;  %v2621_v63 = vld [vmem:[%s2889_s8 + $0x10] sm:$0xff] }
 0x234   :  { %v2593_v37 = vpop.permute.xlu1 %968 }
 0x235   :  { %1004 = vperm.xlu1 %1780, %v2428_v49   ;;  %v586_v49 = vld [vmem:[%s2886_s5 + $0x28] sm:$0xff] }
 0x236   :  { %1560 = vmatmul.mubr.msk.f32.vlgmr.msra.gmra.mrb[16].mxu0 %vm629_vm1, %v581_v60  ;;  %v2626_v60 = vld [vmem:[%s2889_s8 + $0x20] sm:$0xff] }
 0x237   :  { %748 = vmatprep.mubr.f32.mxu0 %v1972_v12  ;;  %1406 = vperm.xlu0 %1785, %v2626_v60  }
 0x238   :  { %v2597_v2 = vpop.permute.xlu1 %972 }
 0x239   :  { %1781 = vset.pattern.permute.xlu1 %v1974_v32 }
 0x23a   :  { %1561 = vmatmul.mubr.msk.f32.gmra.mrb[18].mxu0 %vm629_vm1, %v582_v61  ;;  %916 = vperm.xlu1 %1781, %v620_v25  }
 0x23b   :  { %754 = vmatprep.mubr.f32.mxu0 %v1972_v12 }
 0x23c   :  { %v2599_v3 = vpop.permute.xlu1 %876 }
 0x23e   :  { %1562 = vmatmul.mubr.msk.f32.gmra.mrb[20].mxu0 %vm629_vm1, %v583_v62  ;;  %1783 = vset.pattern.permute.xlu1 %v1973_v21 }
 0x23f   :  { %760 = vmatprep.mubr.f32.mxu0 %v1972_v12  ;;  %1012 = vperm.xlu1 %1783, %v620_v25   ;;  %v852_v25 = vpop.permute.xlu0 %851 }
 0x240   :  { %v2605_v11 = vpop.permute.xlu1 %980 }
 0x242   :  { %1563 = vmatmul.mubr.msk.f32.gmra.mrb[22].mxu0 %vm629_vm1, %v584_v23 }
 0x243   :  { %766 = vmatprep.mubr.f32.mxu0 %v1972_v12  ;;  %1784 = vset.pattern.permute.xlu1 %v1974_v32  ;;  %v589_v32 = vld [vmem:[%s2886_s5 + $0x40] sm:$0xff] }
 0x244   :  { %1386 = vperm.xlu1 %1784, %v621_v58  }
 0x246   :  { %1564 = vmatmul.mubr.msk.f32.gmra.mrb[24].mxu0 %vm629_vm1, %v585_v24 }
 0x247   :  { %772 = vmatprep.mubr.f32.mxu0 %v1972_v12 }
 0x248   :  { %1396 = vperm.xlu1 %1784, %v2621_v63  }
 0x24a   :  { %1565 = vmatmul.mubr.msk.f32.gmra.mrb[26].mxu0 %vm629_vm1, %v586_v49 }
 0x24b   :  { %778 = vmatprep.mubr.f32.mxu0 %v1972_v12 }
 0x24e   :  { %1566 = vmatmul.mubr.msk.f32.gmra.mrb[28].mxu0 %vm629_vm1, %v587_v50 }
 0x24f   :  { %784 = vmatprep.mubr.f32.mxu0 %v1972_v12 }
 0x252   :  { %1567 = vmatmul.mubr.msk.f32.gmra.mrb[30].mxu0 %vm629_vm1, %v588_v26 }
 0x253   :  { %790 = vmatprep.mubr.f32.mxu0 %v1972_v12 }
 0x256   :  { %1568 = vmatmul.mubr.msk.f32.gmra.mrb[32].mxu0 %vm629_vm1, %v589_v32 }
 0x257   :  { %796 = vmatprep.mubr.f32.mxu0 %v1972_v12 }
 0x25a   :  { %1569 = vmatmul.mubr.msk.f32.gmra.mrb[34].mxu0 %vm629_vm1, %v590_v27 }
 0x25b   :  { %802 = vmatprep.mubr.f32.mxu0 %v1972_v12 }
 0x25e   :  { %1570 = vmatmul.mubr.msk.f32.gmra.mrb[36].mxu0 %vm629_vm1, %v591_v28  ;;  %v624_v28 = vld [vmem:[%s2889_s8 + $0x18] sm:$0xff] }
 0x25f   :  { %808 = vmatprep.mubr.f32.mxu0 %v1972_v12  ;;  %1401 = vperm.xlu1 %1784, %v624_v28  }
 0x262   :  { %1571 = vmatmul.mubr.msk.f32.gmra.mrb[38].mxu0 %vm629_vm1, %v592_v29  ;;  %v2644_v29 = vld [vmem:[%s2889_s8 + $0x30] sm:$0xff] }
 0x263   :  { %814 = vmatprep.mubr.f32.mxu0 %v1972_v12  ;;  %1416 = vperm.xlu0 %1785, %v2644_v29  }
 0x266   :  { %1572 = vmatmul.mubr.msk.f32.gmra.mrb[40].mxu0 %vm629_vm1, %v593_v30 }
 0x267   :  { %820 = vmatprep.mubr.f32.mxu0 %v1972_v12  ;;  %1786 = vset.pattern.permute.xlu0 %v1973_v21 }
 0x268   :  { %1441 = vperm.xlu0 %1786, %v621_v58  }
 0x26a   :  { %1573 = vmatmul.mubr.msk.f32.gmra.mrb[42].mxu0 %vm629_vm1, %v594_v33 }
 0x26b   :  { %826 = vmatprep.mubr.f32.mxu0 %v1972_v12 }
 0x26c   :  { %1453 = vperm.xlu0 %1786, %v624_v28  }
 0x26e   :  { %1574 = vmatmul.mubr.msk.f32.gmra.mrb[44].mxu0 %vm629_vm1, %v595_v34 }
 0x26f   :  { %832 = vmatprep.mubr.f32.mxu0 %v1972_v12 }
 0x272   :  { %1575 = vmatmul.mubr.msk.f32.gmra.mrb[46].mxu0 %vm629_vm1, %v596_v38 }
 0x28e   :  { %v2636_v27 = vpop.permute.xlu1 %881 }
 0x309   :  { %v744_v6 = vpop.f32.mrb[16].mxu0 }
 0x30a   :  { %v919_v7 = vmul.f32 %v842_v53, %v744_v6  ;;  %v746_v39 = vpop.f32.mrb[17].mxu0 }
 0x30b   :  { %v920_v8 = vmul.f32 %v842_v53, %v746_v39 }
 0x30c   :  { %v2601_v41 = vadd.f32 %v953_v46, %v919_v7  ;;  %v626_v7 = vld [vmem:[%s2889_s8 + $0x28] sm:$0xff] }
 0x30d   :  { %v2603_v10 = vadd.f32 %v953_v46, %v920_v8  ;;  %v750_v56 = vpop.f32.mrb[18].mxu0  ;;  %1411 = vperm.xlu1 %1784, %v626_v7   ;;  %1461 = vperm.xlu0 %1786, %v626_v7  }
 0x30e   :  { %v1576_v57 = vmul.f32 -1.442695, %v2601_v41  ;;  %v921_v14 = vmul.f32 %v847_v59, %v750_v56  ;;  %v752_v15 = vpop.f32.mrb[19].mxu0 }
 0x30f   :  { %v1577_v45 = vmul.f32 -1.442695, %v2603_v10  ;;  %v922_v51 = vmul.f32 %v847_v59, %v752_v15  ;;  %v2660_v59 = vpop.permute.xlu1 %984 }
 0x310   :  { %1820 = vpow2.f32 %v1576_v57  ;;  %v2628_v61 = vadd.f32 %v957_v36, %v921_v14 }
 0x311   :  { %1822 = vpow2.f32 %v1577_v45  ;;  %v2630_v62 = vadd.f32 %v957_v36, %v922_v51  ;;  %v756_v23 = vpop.f32.mrb[20].mxu0  ;;  %v867_v51 = vpop.permute.xlu0 %866 }
 0x312   :  { %v1578_v24 = vmul.f32 -1.442695, %v2628_v61  ;;  %v923_v49 = vmul.f32 %v852_v25, %v756_v23  ;;  %v758_v50 = vpop.f32.mrb[21].mxu0  ;;  %v628_v23 = vld [vmem:[%s2889_s8 + $0x38] sm:$0xff] }
 0x313   :  { %v1579_v26 = vmul.f32 -1.442695, %v2630_v62  ;;  %v924_v32 = vmul.f32 %v852_v25, %v758_v50  ;;  %1421 = vperm.xlu1 %1784, %v628_v23   ;;  %1469 = vperm.xlu0 %1786, %v628_v23  }
 0x314   :  { %1824 = vpow2.f32 %v1578_v24  ;;  %v2646_v30 = vadd.f32 %v961_v48, %v923_v49 }
 0x315   :  { %1826 = vpow2.f32 %v1579_v26  ;;  %v2648_v33 = vadd.f32 %v961_v48, %v924_v32  ;;  %v762_v34 = vpop.f32.mrb[22].mxu0 }
 0x316   :  { %v1580_v38 = vmul.f32 -1.442695, %v2646_v30  ;;  %v925_v46 = vmul.f32 %v857_v47, %v762_v34  ;;  %v764_v36 = vpop.f32.mrb[23].mxu0 }
 0x317   :  { %v1581_v53 = vmul.f32 -1.442695, %v2648_v33  ;;  %v926_v6 = vmul.f32 %v857_v47, %v764_v36  ;;  %1787 = vset.pattern.permute.xlu1 %v1973_v21 }
 0x318   :  { %1828 = vpow2.f32 %v1580_v38  ;;  %v2656_v39 = vadd.f32 %v965_v52, %v925_v46  ;;  %1445 = vperm.xlu1 %1787, %v2613_v42  }
 0x319   :  { %1830 = vpow2.f32 %v1581_v53  ;;  %v2658_v48 = vadd.f32 %v965_v52, %v926_v6  ;;  %v768_v8 = vpop.f32.mrb[24].mxu0  ;;  %v2678_v6 = vpop.permute.xlu1 %988 }
 0x31a   :  { %v1821_v56 = vpop.eup %1820  ;;  %v1582_v57 = vmul.f32 -1.442695, %v2656_v39  ;;  %v927_v14 = vmul.f32 %v2589_v54, %v768_v8  ;;  %v770_v15 = vpop.f32.mrb[25].mxu0 }
 0x31b   :  { %v1823_v47 = vpop.eup %1822  ;;  %v1143_v45 = vadd.f32 1.0, %v1821_v56  ;;  %v1583_v25 = vmul.f32 -1.442695, %v2658_v48  ;;  %v928_v52 = vmul.f32 %v2589_v54, %v770_v15  ;;  %v872_v56 = vpop.permute.xlu0 %871 }
 0x31c   :  { %v1144_v24 = vadd.f32 1.0, %v1823_v47  ;;  %1832 = vpow2.f32 %v1582_v57  ;;  %v2671_v49 = vadd.f32 %v2593_v37, %v927_v14  ;;  %1449 = vperm.xlu1 %1787, %v2621_v63  }
 0x31d   :  { %1834 = vrcp.f32 %v1143_v45  ;;  %v2674_v50 = vadd.f32 %v2593_v37, %v928_v52  ;;  %v774_v26 = vpop.f32.mrb[26].mxu0 }
 0x31e   :  { %v1825_v32 = vpop.eup %1824  ;;  %1836 = vrcp.f32 %v1144_v24  ;;  %v1584_v34 = vmul.f32 -1.442695, %v2671_v49  ;;  %v929_v54 = vmul.f32 %v867_v51, %v774_v26  ;;  %v776_v38 = vpop.f32.mrb[27].mxu0 }
 0x31f   :  { %v1827_v46 = vpop.eup %1826  ;;  %v1145_v36 = vadd.f32 1.0, %v1825_v32  ;;  %1838 = vpow2.f32 %v1583_v25  ;;  %v1585_v58 = vmul.f32 -1.442695, %v2674_v50  ;;  %v930_v53 = vmul.f32 %v867_v51, %v776_v38  ;;  %v2689_v26 = vpop.permute.xlu1 %896 }
 0x320   :  { %v1146_v8 = vadd.f32 1.0, %v1827_v46  ;;  %1840 = vpow2.f32 %v1584_v34  ;;  %v2681_v37 = vadd.f32 %v2597_v2, %v929_v54  ;;  %1457 = vperm.xlu1 %1787, %v2626_v60  }
 0x321   :  { %1842 = vrcp.f32 %v1145_v36  ;;  %v2684_v57 = vadd.f32 %v2597_v2, %v930_v53  ;;  %v780_v14 = vpop.f32.mrb[28].mxu0 }
 0x322   :  { %v1829_v15 = vpop.eup %1828  ;;  %1844 = vrcp.f32 %v1146_v8  ;;  %v1586_v47 = vmul.f32 -1.442695, %v2681_v37  ;;  %v931_v45 = vmul.f32 %v872_v56, %v780_v14  ;;  %v782_v51 = vpop.f32.mrb[29].mxu0 }
 0x323   :  { %v1831_v28 = vpop.eup %1830  ;;  %v1147_v25 = vadd.f32 1.0, %v1829_v15  ;;  %1846 = vpow2.f32 %v1585_v58  ;;  %v1587_v52 = vmul.f32 -1.442695, %v2684_v57  ;;  %v932_v24 = vmul.f32 %v872_v56, %v782_v51 }
 0x324   :  { %v1148_v2 = vadd.f32 1.0, %v1831_v28  ;;  %1848 = vpow2.f32 %v1586_v47  ;;  %v2693_v32 = vadd.f32 %v2591_v0, %v931_v45  ;;  %v2709_v47 = vpop.permute.xlu1 %996  ;;  %1465 = vperm.xlu1 %1787, %v2644_v29  }
 0x325   :  { %1850 = vrcp.f32 %v1147_v25  ;;  %v2696_v34 = vadd.f32 %v2591_v0, %v932_v24  ;;  %v786_v21 = vpop.f32.mrb[30].mxu0 }
 0x326   :  { %v1833_v54 = vpop.eup %1832  ;;  %1852 = vrcp.f32 %v1148_v2  ;;  %v1588_v38 = vmul.f32 -1.442695, %v2693_v32  ;;  %v933_v46 = vmul.f32 %v2599_v3, %v786_v21  ;;  %v788_v36 = vpop.f32.mrb[31].mxu0 }
 0x327   :  { %v1835_v58 = vpop.eup %1834  ;;  %v1149_v42 = vadd.f32 1.0, %v1833_v54  ;;  %1854 = vpow2.f32 %v1587_v52  ;;  %v1589_v7 = vmul.f32 -1.442695, %v2696_v34  ;;  %v934_v53 = vmul.f32 %v2599_v3, %v788_v36  ;;  %v887_v52 = vpop.permute.xlu0 %886 }
 0x328   :  { %v1837_v0 = vpop.eup %1836  ;;  %1856 = vpow2.f32 %v1588_v38  ;;  %v2704_v8 = vadd.f32 %v2605_v11, %v933_v46  ;;  %v1239_v21 = vmul.f32 %v1835_v58, %v2601_v41 }
 0x329   :  { %v1839_v56 = vpop.eup %1838  ;;  %1858 = vrcp.f32 %v1149_v42  ;;  %v2707_v14 = vadd.f32 %v2605_v11, %v934_v53  ;;  %v792_v15 = vpop.f32.mrb[32].mxu0  ;;  %v1240_v36 = vmul.f32 %v1837_v0, %v2603_v10 }
 0x32a   :  { %v1841_v45 = vpop.eup %1840  ;;  %v1150_v51 = vadd.f32 1.0, %v1839_v56  ;;  %1860 = vpow2.f32 %v1589_v7  ;;  %v1590_v3 = vmul.f32 -1.442695, %v2704_v8  ;;  %v935_v63 = vmul.f32 %v2636_v27, %v792_v15  ;;  %v794_v23 = vpop.f32.mrb[33].mxu0 }
 0x32b   :  { %v1843_v28 = vpop.eup %1842  ;;  %v1151_v25 = vadd.f32 1.0, %v1841_v45  ;;  %v1591_v24 = vmul.f32 -1.442695, %v2707_v14  ;;  %v936_v2 = vmul.f32 %v2636_v27, %v794_v23  ;;  %v2728_v0 = vpop.permute.xlu1 %901 }
 0x32c   :  { %v1845_v11 = vpop.eup %1844  ;;  %v1241_v54 = vmul.f32 %v1843_v28, %v2628_v61  ;;  %1862 = vrcp.f32 %v1150_v51  ;;  %v2719_v38 = vadd.f32 %v2660_v59, %v935_v63  ;;  %v892_v23 = vpop.permute.xlu0 %891 }
 0x32d   :  { %v1847_v46 = vpop.eup %1846  ;;  %v1242_v42 = vmul.f32 %v1845_v11, %v2630_v62  ;;  %1864 = vrcp.f32 %v1151_v25  ;;  %v2724_v7 = vadd.f32 %v2660_v59, %v936_v2  ;;  %v798_v27 = vpop.f32.mrb[34].mxu0 }
 0x32e   :  { %v1849_v60 = vpop.eup %1848  ;;  %v1730_v53 = vpack.c.bf16 %v1241_v54, %v1239_v21  ;;  %v1152_v56 = vadd.f32 1.0, %v1847_v46  ;;  %1866 = vpow2.f32 %v1590_v3  ;;  %v1592_v41 = vmul.f32 -1.442695, %v2719_v38  ;;  %v800_v61 = vpop.f32.mrb[35].mxu0 }
 0x32f   :  { %v1851_v58 = vpop.eup %1850  ;;  %v1153_v15 = vadd.f32 1.0, %v1849_v60  ;;  %1868 = vpow2.f32 %v1591_v24  ;;  %v1593_v45 = vmul.f32 -1.442695, %v2724_v7  ;;  %v937_v10 = vmul.f32 %v887_v52, %v798_v27 }
 0x330   :  { %v1853_v62 = vpop.eup %1852  ;;  %1870 = vrcp.f32 %v1152_v56  ;;  %v938_v59 = vmul.f32 %v887_v52, %v800_v61  ;;  %v1728_v51 = vpack.c.bf16 %v1242_v42, %v1240_v36  ;;  %v2732_v3 = vmul.f32 %v1851_v58, %v2646_v30  ;;  %v1001_v58 = vpop.permute.xlu1 %1000 }
 0x331   :  { %v1855_v63 = vpop.eup %1854  ;;  %1872 = vrcp.f32 %v1153_v15  ;;  %v2735_v28 = vadd.f32 %v2678_v6, %v937_v10  ;;  %v804_v25 = vpop.f32.mrb[36].mxu0 }
 0x332   :  { %v1857_v24 = vpop.eup %1856  ;;  %v1154_v2 = vadd.f32 1.0, %v1855_v63  ;;  %1874 = vpow2.f32 %v1592_v41  ;;  %v2738_v11 = vadd.f32 %v2678_v6, %v938_v59  ;;  %v939_v29 = vmul.f32 %v892_v23, %v804_v25  ;;  %1729 = vmatprep.subr.bf16.mxu1 %v1728_v51  ;;  %v806_v52 = vpop.f32.mrb[37].mxu0 }
 0x333   :  { %v1859_v21 = vpop.eup %1858  ;;  %v1155_v54 = vadd.f32 1.0, %v1857_v24  ;;  %1876 = vpow2.f32 %v1593_v45  ;;  %v1594_v30 = vmul.f32 -1.442695, %v2735_v28  ;;  %v940_v46 = vmul.f32 %v892_v23, %v806_v52  ;;  %1731 = vmatpush1.bf16.msra.mxu1 %v1730_v53 }
 0x334   :  { %v1861_v36 = vpop.eup %1860  ;;  %v1245_v42 = vmul.f32 %v1859_v21, %v2656_v39  ;;  %1878 = vrcp.f32 %v1154_v2  ;;  %v1595_v27 = vmul.f32 -1.442695, %v2738_v11  ;;  %v2744_v60 = vadd.f32 %v2595_v1, %v939_v29 }
 0x335   :  { %v1244_v6 = vmul.f32 %v1853_v62, %v2648_v33  ;;  %1880 = vrcp.f32 %v1155_v54  ;;  %v1156_v56 = vadd.f32 1.0, %v1861_v36  ;;  %v2748_v41 = vadd.f32 %v2595_v1, %v940_v46  ;;  %v810_v61 = vpop.f32.mrb[38].mxu0  ;;  %v907_v33 = vpop.permute.xlu0 %906 }
 0x336   :  { %v1863_v15 = vpop.eup %1862  ;;  %v1734_v53 = vpack.c.bf16 %v1245_v42, %v2732_v3  ;;  %1882 = vpow2.f32 %v1594_v30  ;;  %v1596_v39 = vmul.f32 -1.442695, %v2744_v60  ;;  %v941_v45 = vmul.f32 %v2689_v26, %v810_v61  ;;  %v812_v10 = vpop.f32.mrb[39].mxu0 }
 0x337   :  { %v1865_v59 = vpop.eup %1864  ;;  %v1246_v51 = vmul.f32 %v1863_v15, %v2658_v48  ;;  %1884 = vrcp.f32 %v1156_v56  ;;  %v1597_v62 = vmul.f32 -1.442695, %v2748_v41  ;;  %v942_v1 = vmul.f32 %v2689_v26, %v812_v10  ;;  %v1005_v42 = vpop.permute.xlu1 %1004 }
 0x338   :  { %v1867_v63 = vpop.eup %1866  ;;  %1886 = vpow2.f32 %v1595_v27  ;;  %v2757_v23 = vadd.f32 %v2709_v47, %v941_v45  ;;  %v1247_v27 = vmul.f32 %v1865_v59, %v2671_v49 }
 0x339   :  { %v1869_v3 = vpop.eup %1868  ;;  %v1157_v25 = vadd.f32 1.0, %v1867_v63  ;;  %1888 = vpow2.f32 %v1596_v39  ;;  %v2760_v24 = vadd.f32 %v2709_v47, %v942_v1  ;;  %v816_v2 = vpop.f32.mrb[40].mxu0  ;;  %v1732_v29 = vpack.c.bf16 %v1246_v51, %v1244_v6 }
 0x33a   :  { %v1871_v48 = vpop.eup %1870  ;;  %v1158_v52 = vadd.f32 1.0, %v1869_v3  ;;  %1890 = vpow2.f32 %v1597_v62  ;;  %v1598_v21 = vmul.f32 -1.442695, %v2757_v23  ;;  %v943_v26 = vmul.f32 %v2728_v0, %v816_v2  ;;  %v818_v54 = vpop.f32.mrb[41].mxu0 }
 0x33b   :  { %v1873_v30 = vpop.eup %1872  ;;  %1892 = vrcp.f32 %v1157_v25  ;;  %v1599_v46 = vmul.f32 -1.442695, %v2760_v24  ;;  %1733 = vmatprep.subr.bf16.mxu1 %v1732_v29  ;;  %v944_v36 = vmul.f32 %v2728_v0, %v818_v54  ;;  %v1248_v15 = vmul.f32 %v1871_v48, %v2674_v50  ;;  %v912_v39 = vpop.permute.xlu0 %911 }
 0x33c   :  { %v1875_v47 = vpop.eup %1874  ;;  %v1249_v6 = vmul.f32 %v1873_v30, %v2681_v37  ;;  %1894 = vrcp.f32 %v1158_v52  ;;  %v2768_v56 = vadd.f32 %v1001_v58, %v943_v26  ;;  %1735 = vmatpush1.bf16.msra.mxu1 %v1734_v53  ;;  %v917_v3 = vpop.permute.xlu1 %916 }
 0x33d   :  { %v1877_v61 = vpop.eup %1876  ;;  %v1159_v45 = vadd.f32 1.0, %v1875_v47  ;;  %1896 = vpow2.f32 %v1598_v21  ;;  %v2771_v10 = vadd.f32 %v1001_v58, %v944_v36  ;;  %v822_v51 = vpop.f32.mrb[42].mxu0 }
 0x33e   :  { %v1879_v0 = vpop.eup %1878  ;;  %v1738_v62 = vpack.c.bf16 %v1249_v6, %v1247_v27  ;;  %v1160_v1 = vadd.f32 1.0, %v1877_v61  ;;  %1898 = vpow2.f32 %v1599_v46  ;;  %v1600_v49 = vmul.f32 -1.442695, %v2768_v56  ;;  %v824_v37 = vpop.f32.mrb[43].mxu0 }
 0x33f   :  { %v1881_v59 = vpop.eup %1880  ;;  %v1250_v63 = vmul.f32 %v1879_v0, %v2684_v57  ;;  %1900 = vrcp.f32 %v1159_v45  ;;  %v1601_v53 = vmul.f32 -1.442695, %v2771_v10  ;;  %v945_v50 = vmul.f32 %v907_v33, %v822_v51  ;;  %v1009_v26 = vpop.permute.xlu0 %1008 }
 0x340   :  { %v1883_v25 = vpop.eup %1882  ;;  %1902 = vrcp.f32 %v1160_v1  ;;  %v946_v58 = vmul.f32 %v907_v33, %v824_v37  ;;  %v1251_v47 = vmul.f32 %v1881_v59, %v2693_v32  ;;  %v1013_v37 = vpop.permute.xlu1 %1012 }
 0x341   :  { %v1885_v2 = vpop.eup %1884  ;;  %v1161_v29 = vadd.f32 1.0, %v1883_v25  ;;  %1904 = vpow2.f32 %v1600_v49  ;;  %v2776_v48 = vadd.f32 %v1005_v42, %v945_v50  ;;  %v828_v52 = vpop.f32.mrb[44].mxu0  ;;  %v1736_v21 = vpack.c.bf16 %v1250_v63, %v1248_v15 }
 0x342   :  { %v1887_v54 = vpop.eup %1886  ;;  %1906 = vpow2.f32 %v1601_v53  ;;  %v2778_v30 = vadd.f32 %v1005_v42, %v946_v58  ;;  %v947_v57 = vmul.f32 %v912_v39, %v828_v52  ;;  %v830_v46 = vpop.f32.mrb[45].mxu0  ;;  %v1252_v61 = vmul.f32 %v1885_v2, %v2696_v34 }
 0x343   :  { %v1889_v36 = vpop.eup %1888  ;;  %1908 = vrcp.f32 %v1161_v29  ;;  %v1162_v27 = vadd.f32 1.0, %v1887_v54  ;;  %1737 = vmatprep.subr.bf16.mxu1 %v1736_v21  ;;  %v948_v33 = vmul.f32 %v912_v39, %v830_v46  ;;  %v1602_v15 = vmul.f32 -1.442695, %v2776_v48 }
 0x344   :  { %v1891_v6 = vpop.eup %1890  ;;  %v1163_v45 = vadd.f32 1.0, %v1889_v36  ;;  %1739 = vmatpush1.bf16.msra.mxu1 %v1738_v62  ;;  %v2783_v51 = vadd.f32 %v1009_v26, %v947_v57  ;;  %v1603_v1 = vmul.f32 -1.442695, %v2778_v30 }
 0x345   :  { %v1893_v42 = vpop.eup %1892  ;;  %1910 = vrcp.f32 %v1162_v27  ;;  %v1164_v0 = vadd.f32 1.0, %v1891_v6  ;;  %v2786_v49 = vadd.f32 %v1009_v26, %v948_v33  ;;  %v834_v32 = vpop.f32.mrb[46].mxu0 }
 0x346   :  { %v1895_v59 = vpop.eup %1894  ;;  %v1253_v39 = vmul.f32 %v1893_v42, %v2704_v8  ;;  %1912 = vrcp.f32 %v1163_v45  ;;  %v1604_v34 = vmul.f32 -1.442695, %v2783_v51  ;;  %v949_v63 = vmul.f32 %v917_v3, %v834_v32  ;;  %v836_v53 = vpop.f32.mrb[47].mxu0 }
 0x347   :  { %v1897_v62 = vpop.eup %1896  ;;  %v1254_v50 = vmul.f32 %v1895_v59, %v2707_v14  ;;  %1914 = vrcp.f32 %v1164_v0  ;;  %v1605_v25 = vmul.f32 -1.442695, %v2786_v49  ;;  %v950_v58 = vmul.f32 %v917_v3, %v836_v53 }
 0x348   :  { %v1899_v2 = vpop.eup %1898  ;;  %v1742_v29 = vpack.c.bf16 %v1253_v39, %v1251_v47  ;;  %v1165_v52 = vadd.f32 1.0, %v1897_v62  ;;  %1916 = vpow2.f32 %v1602_v15  ;;  %v2792_v21 = vadd.f32 %v1013_v37, %v949_v63 }
 0x349   :  { %v1901_v26 = vpop.eup %1900  ;;  %v1166_v8 = vadd.f32 1.0, %v1899_v2  ;;  %1918 = vpow2.f32 %v1603_v1  ;;  %v2794_v54 = vadd.f32 %v1013_v37, %v950_v58  ;;  %v1740_v57 = vpack.c.bf16 %v1254_v50, %v1252_v61 }
 0x34a   :  { %v1903_v46 = vpop.eup %1902  ;;  %1920 = vrcp.f32 %v1165_v52  ;;  %v1606_v3 = vmul.f32 -1.442695, %v2792_v21  ;;  %v1255_v33 = vmul.f32 %v1901_v26, %v2719_v38 }
 0x34b   :  { %v1905_v36 = vpop.eup %1904  ;;  %1922 = vrcp.f32 %v1166_v8  ;;  %1741 = vmatprep.subr.bf16.mxu1 %v1740_v57  ;;  %v1607_v27 = vmul.f32 -1.442695, %v2794_v54  ;;  %v1256_v61 = vmul.f32 %v1903_v46, %v2724_v7 }
 0x34c   :  { %v1907_v14 = vpop.eup %1906  ;;  %1924 = vpow2.f32 %v1604_v34  ;;  %1743 = vmatpush1.bf16.msra.mxu1 %v1742_v29  ;;  %v1167_v15 = vadd.f32 1.0, %v1905_v36 }
 0x34d   :  { %v1909_v47 = vpop.eup %1908  ;;  %1926 = vpow2.f32 %v1605_v25  ;;  %v1168_v32 = vadd.f32 1.0, %v1907_v14 }
 0x34e   :  { %v1257_v6 = vmul.f32 %v1909_v47, %v2735_v28  ;;  %1928 = vpow2.f32 %v1606_v3 }
 0x34f   :  { %v1911_v45 = vpop.eup %1910  ;;  %1930 = vpow2.f32 %v1607_v27 }
 0x350   :  { %v1913_v42 = vpop.eup %1912  ;;  %v1746_v0 = vpack.c.bf16 %v1257_v6, %v1255_v33  ;;  %v1258_v1 = vmul.f32 %v1911_v45, %v2738_v11  ;;  %1932 = vrcp.f32 %v1167_v15 }
 0x351   :  { %v1915_v37 = vpop.eup %1914  ;;  %1934 = vrcp.f32 %v1168_v32  ;;  %v1259_v7 = vmul.f32 %v1913_v42, %v2744_v60 }
 0x352   :  { %v1917_v59 = vpop.eup %1916  ;;  %v1744_v39 = vpack.c.bf16 %v1258_v1, %v1256_v61  ;;  %v1260_v50 = vmul.f32 %v1915_v37, %v2748_v41  ;;  %v602_v37 = vld [vmem:[%s2888_s7 + $0x28] sm:$0xff] }
 0x353   :  { %v1919_v34 = vpop.eup %1918  ;;  %v1169_v63 = vadd.f32 1.0, %v1917_v59  ;;  %v603_v59 = vld [vmem:[%s2888_s7 + $0x30] sm:$0xff] }
 0x354   :  { %v1921_v38 = vpop.eup %1920  ;;  %v1170_v28 = vadd.f32 1.0, %v1919_v34  ;;  %1745 = vmatprep.subr.bf16.mxu1 %v1744_v39  ;;  %v604_v39 = vld [vmem:[%s2888_s7 + $0x38] sm:$0xff]  ;;  %v1387_v34 = vpop.permute.xlu1 %1386 }
 0x355   :  { %v1923_v53 = vpop.eup %1922  ;;  %v1261_v62 = vmul.f32 %v1921_v38, %v2757_v23  ;;  %1936 = vrcp.f32 %v1169_v63  ;;  %1747 = vmatpush1.bf16.msra.mxu1 %v1746_v0  ;;  %v1392_v38 = vpop.permute.xlu0 %1391 }
 0x356   :  { %v1925_v11 = vpop.eup %1924  ;;  %v1262_v25 = vmul.f32 %v1923_v53, %v2760_v24  ;;  %1938 = vrcp.f32 %v1170_v28 }
 0x357   :  { %v1927_v58 = vpop.eup %1926  ;;  %v1750_v2 = vpack.c.bf16 %v1261_v62, %v1259_v7  ;;  %v1171_v29 = vadd.f32 1.0, %v1925_v11 }
 0x358   :  { %v1172_v52 = vadd.f32 1.0, %v1927_v58  ;;  %v1748_v26 = vpack.c.bf16 %v1262_v25, %v1260_v50  ;;  %v1929_v8 = vpop.eup %1928  ;;  %v1397_v63 = vpop.permute.xlu1 %1396 }
 0x359   :  { %v1931_v57 = vpop.eup %1930  ;;  %1940 = vrcp.f32 %v1171_v29  ;;  %v1173_v60 = vadd.f32 1.0, %v1929_v8  ;;  %v1407_v53 = vpop.permute.xlu0 %1406 }
 0x35a   :  { %1749 = vmatprep.subr.bf16.mxu1 %v1748_v26  ;;  %1942 = vrcp.f32 %v1172_v52  ;;  %v1174_v23 = vadd.f32 1.0, %v1931_v57  ;;  %v1933_v46 = vpop.eup %1932 }
 0x35b   :  { %1751 = vmatpush1.bf16.msra.mxu1 %v1750_v2  ;;  %1944 = vrcp.f32 %v1173_v60  ;;  %v1935_v36 = vpop.eup %1934  ;;  %v1263_v14 = vmul.f32 %v1933_v46, %v2768_v56 }
 0x35c   :  { %1946 = vrcp.f32 %v1174_v23  ;;  %v1264_v47 = vmul.f32 %v1935_v36, %v2771_v10  ;;  %v1402_v28 = vpop.permute.xlu1 %1401 }
 0x35d   :  { %v2845_v62 = vpop.permute.xlu0 %1416 }
 0x35f   :  { %v1937_v41 = vpop.eup %1936 }
 0x360   :  { %v1939_v24 = vpop.eup %1938  ;;  %v1265_v3 = vmul.f32 %v1937_v41, %v2776_v48 }
 0x361   :  { %v1266_v27 = vmul.f32 %v1939_v24, %v2778_v30  ;;  %v597_v30 = vld [vmem:[%s2888_s7] sm:$0xff]  ;;  %v1442_v25 = vpop.permute.xlu0 %1441 }
 0x362   :  { %v1754_v33 = vpack.c.bf16 %v1265_v3, %v1263_v14 }
 0x363   :  { %v1752_v6 = vpack.c.bf16 %v1266_v27, %v1264_v47  ;;  %v1941_v45 = vpop.eup %1940 }
 0x364   :  { %v1943_v61 = vpop.eup %1942  ;;  %v1267_v0 = vmul.f32 %v1941_v45, %v2783_v51  ;;  %v598_v51 = vld [vmem:[%s2888_s7 + $0x8] sm:$0xff] }
 0x365   :  { %1753 = vmatprep.subr.bf16.mxu1 %v1752_v6  ;;  %v1945_v15 = vpop.eup %1944  ;;  %v1268_v56 = vmul.f32 %v1943_v61, %v2786_v49  ;;  %v599_v49 = vld [vmem:[%s2888_s7 + $0x10] sm:$0xff] }
 0x366   :  { %1755 = vmatpush1.bf16.msra.mxu1 %v1754_v33  ;;  %v1947_v42 = vpop.eup %1946  ;;  %v1269_v1 = vmul.f32 %v1945_v15, %v2792_v21  ;;  %v600_v21 = vld [vmem:[%s2888_s7 + $0x18] sm:$0xff] }
 0x367   :  { %v1270_v48 = vmul.f32 %v1947_v42, %v2794_v54  ;;  %v601_v54 = vld [vmem:[%s2888_s7 + $0x20] sm:$0xff]  ;;  %s1975_s7 = smov [#allocation2]  }
 0x368   :  { %v1758_v32 = vpack.c.bf16 %v1269_v1, %v1267_v0  ;;  %s1525_s24 = sshll.u32 %s1975_s7, 4  ;;  %s1526_s24 = int_to_ptr.vmem [resolvable:$true] %s1525_s24 }
 0x369   :  { %v1756_v10 = vpack.c.bf16 %v1270_v48, %v1268_v56  ;;  %v1454_v48 = vpop.permute.xlu0 %1453  ;;  %s1948_s25 = scalar_lea.vmem %s1526_s24, 2048  ;;  %p1953_p1 = scmp.lt.s32.totalorder %s1526_s24, %s1526_s24 }
 0x36a   :  { %p1949_p0 = scmp.ne.s32.totalorder %s1526_s24, %s1948_s25  ;;  %p1954_p2 = scmp.lt.s32.totalorder %s1948_s25, %s1948_s25 }
 0x36b   :  { %1757 = vmatprep.subr.bf16.mxu1 %v1756_v10 }
 0x36c   :  { %1759 = vmatpush1.bf16.msra.mxu1 %v1758_v32  ;;  %p1955_p3 = por %p1954_p2, %p1953_p1 }
 0x36e   :  { %p1956_p4 = pnand %p1955_p3, %p1949_p0 }
 0x36f   :  { %1336 = vmatmul.mubr.f32.vlgmr.msra.gmra.mrb[32].mxu1 %v597_v30 }
 0x370   :  { %1341 = vmatprep.mubr.f32.mxu1 %v1972_v12 }
 0x373   :  { %1342 = vmatmul.mubr.f32.gmra.mrb[34].mxu1 %v598_v51 }
 0x374   :  { %1347 = vmatprep.mubr.f32.mxu1 %v1972_v12 }
 0x377   :  { %1348 = vmatmul.mubr.f32.gmra.mrb[36].mxu1 %v599_v49 }
 0x378   :  { %1353 = vmatprep.mubr.f32.mxu1 %v1972_v12 }
 0x37b   :  { %1354 = vmatmul.mubr.f32.gmra.mrb[38].mxu1 %v600_v21 }
 0x37c   :  { %1359 = vmatprep.mubr.f32.mxu1 %v1972_v12 }
 0x37f   :  { %1360 = vmatmul.mubr.f32.gmra.mrb[40].mxu1 %v601_v54 }
 0x380   :  { %1365 = vmatprep.mubr.f32.mxu1 %v1972_v12 }
 0x383   :  { %1366 = vmatmul.mubr.f32.gmra.mrb[42].mxu1 %v602_v37 }
 0x384   :  { %1371 = vmatprep.mubr.f32.mxu1 %v1972_v12 }
 0x387   :  { %1372 = vmatmul.mubr.f32.gmra.mrb[44].mxu1 %v603_v59 }
 0x388   :  { %1377 = vmatprep.mubr.f32.mxu1 %v1972_v12 }
 0x38b   :  { %1378 = vmatmul.mubr.f32.gmra.mrb[46].mxu1 %v604_v39 }
 0x38c   :  { %v1412_v7 = vpop.permute.xlu1 %1411 }
 0x392   :  { %v2847_v11 = vpop.permute.xlu1 %1421 }
 0x397   :  { %v1446_v29 = vpop.permute.xlu1 %1445 }
 0x39b   :  { %v1450_v3 = vpop.permute.xlu1 %1449 }
 0x39f   :  { %v1458_v54 = vpop.permute.xlu1 %1457 }
 0x442   :  { %v1337_v50 = vpop.f32.mrb[32].mxu1 }
 0x443   :  { %v1424_v58 = vmul.f32 %v1387_v34, %v1337_v50  ;;  %v1339_v2 = vpop.f32.mrb[33].mxu1 }
 0x444   :  { %v1425_v12 = vmul.f32 %v1387_v34, %v1339_v2 }
 0x445   :  { %v1472_v52 = vadd.f32 %v1442_v25, %v1424_v58 }
 0x446   :  { %v1473_v26 = vadd.f32 %v1442_v25, %v1425_v12  ;;  %v1343_v8 = vpop.f32.mrb[34].mxu1  ;;  %v1466_v12 = vpop.permute.xlu1 %1465 }
 0x447   :  { %v1488_v57 = vadd.f32 %v1472_v52, %v2415_v19  ;;  %v1426_v60 = vmul.f32 %v1392_v38, %v1343_v8  ;;  %v1345_v23 = vpop.f32.mrb[35].mxu1 }
 0x448   :  { %v1489_v46 = vadd.f32 %v1473_v26, %v2409_v16  ;;  %v1427_v36 = vmul.f32 %v1392_v38, %v1345_v23  ;;  %v1462_v38 = vpop.permute.xlu0 %1461 }
 0x449   :  { %1504 = vst [vmem:[#allocation2] sm:$0xff] %v1488_v57  ;;  %v1474_v41 = vadd.f32 %v1446_v29, %v1426_v60 }
 0x44a   :  { %1505 = vst [vmem:[#allocation2 + $0x8] sm:$0xff] %v1489_v46  ;;  %v1475_v24 = vadd.f32 %v1446_v29, %v1427_v36  ;;  %v1349_v14 = vpop.f32.mrb[36].mxu1 }
 0x44b   :  { %v1490_v47 = vadd.f32 %v1474_v41, %v2406_v13  ;;  %v1428_v27 = vmul.f32 %v1397_v63, %v1349_v14  ;;  %v1351_v33 = vpop.f32.mrb[37].mxu1 }
 0x44c   :  { %v1491_v6 = vadd.f32 %v1475_v24, %v2412_v17  ;;  %v1429_v45 = vmul.f32 %v1397_v63, %v1351_v33  ;;  %v1470_v57 = vpop.permute.xlu0 %1469 }
 0x44d   :  { %1506 = vst [vmem:[#allocation2 + $0x10] sm:$0xff] %v1490_v47  ;;  %v1476_v19 = vadd.f32 %v1450_v3, %v1428_v27 }
 0x44e   :  { %1507 = vst [vmem:[#allocation2 + $0x18] sm:$0xff] %v1491_v6  ;;  %v1477_v61 = vadd.f32 %v1450_v3, %v1429_v45  ;;  %v1355_v15 = vpop.f32.mrb[38].mxu1 }
 0x44f   :  { %v1492_v16 = vadd.f32 %v1476_v19, %v2447_v55  ;;  %v1430_v42 = vmul.f32 %v1402_v28, %v1355_v15  ;;  %v1357_v0 = vpop.f32.mrb[39].mxu1 }
 0x450   :  { %v1493_v1 = vadd.f32 %v1477_v61, %v2439_v35  ;;  %v1431_v56 = vmul.f32 %v1402_v28, %v1357_v0 }
 0x451   :  { %1508 = vst [vmem:[#allocation2 + $0x20] sm:$0xff] %v1492_v16  ;;  %v1478_v13 = vadd.f32 %v1454_v48, %v1430_v42 }
 0x452   :  { %1509 = vst [vmem:[#allocation2 + $0x28] sm:$0xff] %v1493_v1  ;;  %v1479_v32 = vadd.f32 %v1454_v48, %v1431_v56  ;;  %v1361_v10 = vpop.f32.mrb[40].mxu1 }
 0x453   :  { %v1494_v17 = vadd.f32 %v1478_v13, %v2432_v31  ;;  %v1432_v30 = vmul.f32 %v1407_v53, %v1361_v10  ;;  %v1363_v51 = vpop.f32.mrb[41].mxu1 }
 0x454   :  { %v1495_v49 = vadd.f32 %v1479_v32, %v2442_v44  ;;  %v1433_v21 = vmul.f32 %v1407_v53, %v1363_v51 }
 0x455   :  { %1510 = vst [vmem:[#allocation2 + $0x30] sm:$0xff] %v1494_v17  ;;  %v1480_v55 = vadd.f32 %v1458_v54, %v1432_v30 }
 0x456   :  { %1511 = vst [vmem:[#allocation2 + $0x38] sm:$0xff] %v1495_v49  ;;  %v1481_v37 = vadd.f32 %v1458_v54, %v1433_v21  ;;  %v1367_v35 = vpop.f32.mrb[42].mxu1 }
 0x457   :  { %v1496_v59 = vadd.f32 %v1480_v55, %v2471_v9  ;;  %v1434_v39 = vmul.f32 %v1412_v7, %v1367_v35  ;;  %v1369_v34 = vpop.f32.mrb[43].mxu1 }
 0x458   :  { %v1497_v63 = vadd.f32 %v1481_v37, %v2464_v40  ;;  %v1435_v28 = vmul.f32 %v1412_v7, %v1369_v34 }
 0x459   :  { %1512 = vst [vmem:[#allocation2 + $0x40] sm:$0xff] %v1496_v59  ;;  %v1482_v31 = vadd.f32 %v1462_v38, %v1434_v39 }
 0x45a   :  { %1513 = vst [vmem:[#allocation2 + $0x48] sm:$0xff] %v1497_v63  ;;  %v1483_v50 = vadd.f32 %v1462_v38, %v1435_v28  ;;  %v1373_v44 = vpop.f32.mrb[44].mxu1 }
 0x45b   :  { %v1498_v53 = vadd.f32 %v1482_v31, %v2457_v4  ;;  %v1436_v25 = vmul.f32 %v2845_v62, %v1373_v44  ;;  %v1375_v58 = vpop.f32.mrb[45].mxu1 }
 0x45c   :  { %v1499_v2 = vadd.f32 %v1483_v50, %v2467_v5  ;;  %v1437_v9 = vmul.f32 %v2845_v62, %v1375_v58 }
 0x45d   :  { %1514 = vst [vmem:[#allocation2 + $0x50] sm:$0xff] %v1498_v53  ;;  %v1484_v29 = vadd.f32 %v1466_v12, %v1436_v25 }
 0x45e   :  { %1515 = vst [vmem:[#allocation2 + $0x58] sm:$0xff] %v1499_v2  ;;  %v1485_v40 = vadd.f32 %v1466_v12, %v1437_v9  ;;  %v1379_v7 = vpop.f32.mrb[46].mxu1 }
 0x45f   :  { %v1500_v52 = vadd.f32 %v1484_v29, %v2492_v22  ;;  %v1438_v26 = vmul.f32 %v2847_v11, %v1379_v7  ;;  %v1381_v8 = vpop.f32.mrb[47].mxu1 }
 0x460   :  { %v1501_v4 = vadd.f32 %v1485_v40, %v2486_v20  ;;  %v1439_v60 = vmul.f32 %v2847_v11, %v1381_v8 }
 0x461   :  { %1516 = vst [vmem:[#allocation2 + $0x60] sm:$0xff] %v1500_v52  ;;  %v1486_v5 = vadd.f32 %v1470_v57, %v1438_v26 }
 0x462   :  { %1517 = vst [vmem:[#allocation2 + $0x68] sm:$0xff] %v1501_v4  ;;  %v1487_v62 = vadd.f32 %v1470_v57, %v1439_v60 }
 0x463   :  { %v1502_v23 = vadd.f32 %v1486_v5, %v2483_v18 }
 0x464   :  { %v1503_v46 = vadd.f32 %v1487_v62, %v2489_v43 }
 0x465   :  { %1518 = vst [vmem:[#allocation2 + $0x70] sm:$0xff] %v1502_v23 }
 0x466   :  { %1519 = vst [vmem:[#allocation2 + $0x78] sm:$0xff] %v1503_v46 }
 0x467   :  { %1959 = shalt.err (!%p1956_p4)
}
 0x468   :  { %s1960_s0 = scalar_lea.hbm %s2890_s9, 2048 }
 0x469   :  { %p1961_p5 = scmp.ne.s32.totalorder %s2890_s9, %s1960_s0  ;;  %p1964_p6 = scmp.lt.u32.totalorder %s1960_s0, %s2890_s9 }
 0x46b   :  { %p1966_p7 = pnand %p1964_p6, %p1961_p5 }
 0x46d   :  { %1969 = shalt.err (!%p1966_p7)
}
 0x46e   :  { %s1976_s10 = smov 256   ;;  %s1977_s1 = smov 16  }
 0x46f   :  { %1531 = dma.vmem_to_hbm [thread:$0]  %s1526_s24, 2048, %s2890_s9, [#allocation3], %s1976_s10, %s1976_s10, %s1977_s1  }
 0x470   :  { %1970 = dma.done.wait [#allocation3], 2048  }
 0x471   :  { %1971 = vsyncadd [#allocation3], 4294965248 }
 0x472   :  { %1535 = vsyncpa [#allocation3], 1 }

</bundles_post_ra>
